<compile_context>
chip_gen: v6e
topology: v6e:2x2x1
jax: 0.10.0
libtpu: 0.0.40
codegen_flags: <defaults>
</compile_context>

<pallas_src>
import jax
import jax.numpy as jnp
from jax import lax
from jax.experimental import pallas as pl
from jax.experimental.pallas import tpu as pltpu

_BN_EPS = 1e-5
_TAU = 0.01


def _make_kernel(bs, num_total, tile_n, mxu_dtype, approx_recip):
    n_tiles = num_total // tile_n
    inv_cnt = 1.0 / float(bs * num_total)   # 1/(bs*N): BN count and the loss mean

    def kernel(f_ref, xyz_ref,
               w1_ref, b1_ref, g1_ref, be1_ref,
               w2_ref, b2_ref, g2_ref, be2_ref,
               w3_ref, b3_ref,
               out_ref,
               sum1, sumsq1, sum2, sumsq2,
               pi_sc, mu_x_sc, mu_f_sc, loss_sc):
        p = pl.program_id(0)   # pass: 0 BN1 stats, 1 BN2 stats, 2 pi/centroids, 3 losses
        b = pl.program_id(1)   # batch element
        t = pl.program_id(2)   # tile along the points axis

        K = w3_ref.shape[0]
        f2d = f_ref[...]                                   # (D, TN), points lane-dense

        def conv(x, w_ref, bias_ref):
            # 1x1 Conv1d == 2-D matmul; weight is the shared MXU operand (no batch
            # broadcast), activations cast to the MXU dtype, accumulation in f32.
            w = w_ref[...]
            return (jnp.dot(w, x.astype(w.dtype),
                            preferred_element_type=jnp.float32) + bias_ref[...])

        def bn_relu(h, s_ref, sq_ref, g_ref, be_ref):
            # BatchNorm1d (training mode) from accumulated sum / sum-of-squares.
            mean = s_ref[...] * inv_cnt                    # (C, 1)
            var = sq_ref[...] * inv_cnt - mean * mean
            scale = lax.rsqrt(var + _BN_EPS) * g_ref[...]
            return jnp.maximum((h - mean) * scale + be_ref[...], 0.0)

        def logits_from(x):
            h = bn_relu(conv(x, w1_ref, b1_ref), sum1, sumsq1, g1_ref, be1_ref)
            h = bn_relu(conv(h, w2_ref, b2_ref), sum2, sumsq2, g2_ref, be2_ref)
            return conv(h, w3_ref, b3_ref)                 # (K, TN)

        first = jnp.logical_and(jnp.logical_and(p == 0, b == 0), t == 0)

        @pl.when(first)
        def _():
            sum1[...] = jnp.zeros_like(sum1)
            sumsq1[...] = jnp.zeros_like(sumsq1)
            sum2[...] = jnp.zeros_like(sum2)
            sumsq2[...] = jnp.zeros_like(sumsq2)
            pi_sc[...] = jnp.zeros_like(pi_sc)
            mu_x_sc[...] = jnp.zeros_like(mu_x_sc)
            mu_f_sc[...] = jnp.zeros_like(mu_f_sc)
            loss_sc[...] = jnp.zeros_like(loss_sc)

        @pl.when(p == 0)        # ---- pass 0: BN1 batch statistics
        def _():
            h1 = conv(f2d, w1_ref, b1_ref)
            sum1[...] += jnp.sum(h1, axis=1, keepdims=True)
            sumsq1[...] += jnp.sum(h1 * h1, axis=1, keepdims=True)

        @pl.when(p == 1)        # ---- pass 1: BN2 batch statistics
        def _():
            h1 = bn_relu(conv(f2d, w1_ref, b1_ref), sum1, sumsq1, g1_ref, be1_ref)
            h2 = conv(h1, w2_ref, b2_ref)
            sum2[...] += jnp.sum(h2, axis=1, keepdims=True)
            sumsq2[...] += jnp.sum(h2 * h2, axis=1, keepdims=True)

        @pl.when(p == 2)        # ---- pass 2: soft assignments -> pi and raw centroids
        def _():
            ls = logits_from(f2d)                          # (K, TN)
            m = jnp.max(ls, axis=0, keepdims=True)
            e = jnp.exp(ls - m)
            s = jnp.sum(e, axis=0, keepdims=True)
            score = e * pl.reciprocal(s, approx=approx_recip)      # (K, TN)
            # transpose the SMALL score operand so the centroid matmuls are in the
            # native (M, C) @ (C, N) MXU form; the (D, TN) feature is never relaid.
            score_t = jnp.transpose(score)                 # (TN, K)
            pi_sc[b] += jnp.sum(score_t, axis=0, keepdims=True)            # (1, K)
            x2d = xyz_ref[...]                             # (3, TN)
            mu_x_sc[b] += jnp.dot(x2d, score_t,
                                  preferred_element_type=jnp.float32)      # (3, K) tiny -> f32
            mu_f_sc[b] += jnp.dot(f2d.astype(mxu_dtype), score_t.astype(mxu_dtype),
                                  preferred_element_type=jnp.float32)      # (D, K)

        @pl.when(p == 3)        # ---- pass 3: regularizers + assignment CE losses
        def _():
            # finalize centroids from the accumulated raw sums (K-sized, cheap)
            inv_pi = 1.0 / jnp.maximum(pi_sc[b], 1e-4)     # (1, K)
            mu_x = mu_x_sc[b] * inv_pi                     # (3, K)
            mu_f = mu_f_sc[b] * inv_pi                     # (D, K)
            inv_nmu = lax.rsqrt(jnp.maximum(
                jnp.sum(mu_f * mu_f, axis=0, keepdims=True), 1e-24))
            n_mu = mu_f * inv_nmu                          # (D, K), unit columns
            n_mu_kd = jnp.transpose(n_mu)                  # (K, D)
            mu_x_kd = jnp.transpose(mu_x)                  # (K, 3)

            @pl.when(t == 0)    # per-batch regularizers, added once
            def _():
                eye = (lax.broadcasted_iota(jnp.int32, (K, K), 0)
                       == lax.broadcasted_iota(jnp.int32, (K, K), 1)).astype(jnp.float32)
                gram_f = jnp.dot(n_mu_kd, n_mu, preferred_element_type=jnp.float32)
                gram_x = jnp.dot(mu_x_kd, mu_x, preferred_element_type=jnp.float32)
                reg = (1e-4 * jnp.mean(jnp.abs(gram_f - eye))
                       + 0.001 * 1e-4 * jnp.mean(jnp.abs(gram_x - eye)))
                loss_sc[...] += reg * (1.0 / bs)

            log_score = logits_from(f2d)                   # (K, TN)
            m = jnp.max(log_score, axis=0, keepdims=True)
            e = jnp.exp(log_score - m)
            s = jnp.sum(e, axis=0, keepdims=True)
            log_sm = (log_score - m) - jnp.log(s)          # (K, TN)

            def assign_ce(cross, sq_ctr):
                # assignment softmax fused with the CE contraction; per-point
                # constants (||x||^2, mean-over-K) dropped by shift invariance.
                logits = (2.0 * cross - sq_ctr) * (1.0 / _TAU)
                mm = jnp.max(logits, axis=0, keepdims=True)
                ee = jnp.exp(logits - mm)
                num = jnp.sum(ee * log_sm, axis=0, keepdims=True)
                den = jnp.sum(ee, axis=0, keepdims=True)
                per_pt = num * pl.reciprocal(den, approx=approx_recip)
                return -jnp.sum(per_pt) * inv_cnt

            # xyz branch: contraction depth 3 -> VPU broadcasts, lane-dense in N
            x2d = xyz_ref[...]
            cross_x = (mu_x_kd[:, 0:1] * x2d[0:1, :]
                       + mu_x_kd[:, 1:2] * x2d[1:2, :]
                       + mu_x_kd[:, 2:3] * x2d[2:3, :])    # (K, TN)
            sq_x_ctr = jnp.sum(mu_x_kd * mu_x_kd, axis=1, keepdims=True)
            loss_x = assign_ce(cross_x, sq_x_ctr)

            # feature branch: n_f never materialized; cross with raw f, post-scale
            # by 1/||f|| per point.
            f32 = f2d.astype(jnp.float32)
            inv_nf = lax.rsqrt(jnp.maximum(
                jnp.sum(f32 * f32, axis=0, keepdims=True), 1e-24))         # (1, TN)
            cross_f = jnp.dot(n_mu_kd.astype(mxu_dtype), f2d.astype(mxu_dtype),
                              preferred_element_type=jnp.float32) * inv_nf
            sq_f_ctr = jnp.sum(n_mu_kd * n_mu_kd, axis=1, keepdims=True)
            loss_f = assign_ce(cross_f, sq_f_ctr)

            loss_sc[...] += loss_x + loss_f

            @pl.when(jnp.logical_and(b == bs - 1, t == n_tiles - 1))
            def _():
                out_ref[...] = loss_sc[...]

    return kernel


def pointcluds_forward(feature_ncw, xyz_ncw, params, *,
                       mxu_dtype=jnp.bfloat16, approx_recip=True, tile_n=None):
    """feature_ncw: (bs, dim, num), xyz_ncw: (bs, 3, num) -- native PyTorch NCW layout."""
    W1, b1, g1, be1, W2, b2, g2, be2, W3, b3 = params
    x = xyz_ncw.astype(jnp.float32)
    bs, D, N = feature_ncw.shape
    hid = W1.shape[0]
    K = W3.shape[0]

    # feature tiles feed only the MXU (and a per-point norm), so ship them in the
    # MXU dtype to halve their DMA; everything scalar/BN stays f32.
    f = feature_ncw.astype(mxu_dtype)

    # points-axis tile: largest 128-multiple that divides N and keeps a (D, TN) f32
    # tile <= ~8 MiB (fits double-buffered on v7x's 64 MiB VMEM); else the full axis.
    if tile_n is None:
        tile_n = N
        for cand in (1024, 512, 256, 128):
            if N >= cand and N % cand == 0 and D * cand * 4 <= (8 << 20):
                tile_n = cand
                break
    n_tiles = N // tile_n

    col = lambda v: v.astype(jnp.float32).reshape(-1, 1)
    ins = [f, x,
           W1.astype(mxu_dtype), col(b1), col(g1), col(be1),
           W2.astype(mxu_dtype), col(b2), col(g2), col(be2),
           W3.astype(mxu_dtype), col(b3)]

    full2d = lambda a: pl.BlockSpec(a.shape, lambda p, b, t: (0, 0))
    in_specs = ([pl.BlockSpec((None, D, tile_n), lambda p, b, t: (b, 0, t)),
                 pl.BlockSpec((None, 3, tile_n), lambda p, b, t: (b, 0, t))]
                + [full2d(a) for a in ins[2:]])
    out_specs = pl.BlockSpec((1, 1), lambda p, b, t: (0, 0))

    scratch = [
        pltpu.VMEM((hid, 1), jnp.float32),    # BN1 sum
        pltpu.VMEM((hid, 1), jnp.float32),    # BN1 sum of squares
        pltpu.VMEM((hid, 1), jnp.float32),    # BN2 sum
        pltpu.VMEM((hid, 1), jnp.float32),    # BN2 sum of squares
        pltpu.VMEM((bs, 1, K), jnp.float32),  # pi (cluster mass)
        pltpu.VMEM((bs, 3, K), jnp.float32),  # raw xyz centroids
        pltpu.VMEM((bs, D, K), jnp.float32),  # raw feature centroids
        pltpu.VMEM((1, 1), jnp.float32),      # loss accumulator
    ]

    # per-generation VMEM budget: ~3/4 of physical, capped at 100 MiB
    try:
        cap = pltpu.get_tpu_info().vmem_capacity_bytes
        vmem_limit = min(int(cap * 3 // 4), 100 * 1024 * 1024)
    except Exception:  # pragma: no cover - conservative fallback
        vmem_limit = 64 * 1024 * 1024

    conv_flops_pt = 2 * (D * hid + hid * hid + hid * K)
    flops = (bs * N * (3 * conv_flops_pt + 2 * K * (D + 3) + 2 * K * D
                       + 40 * (hid + K))
             + 2 * bs * K * K * (D + 3))
    transcendentals = bs * N * (5 * K + 8)
    bytes_accessed = (4 * f.size * f.dtype.itemsize + 2 * x.size * 4
                      + 4 * sum(int(a.size) for a in ins[2:]) + 4)

    kernel = _make_kernel(bs, N, tile_n, mxu_dtype, approx_recip)
    out = pl.pallas_call(
        kernel,
        out_shape=jax.ShapeDtypeStruct((1, 1), jnp.float32),
        grid_spec=pltpu.PrefetchScalarGridSpec(
            num_scalar_prefetch=0,
            grid=(4, bs, n_tiles),
            in_specs=in_specs,
            out_specs=out_specs,
            scratch_shapes=scratch),
        compiler_params=pltpu.CompilerParams(
            dimension_semantics=("arbitrary", "arbitrary", "arbitrary"),
            vmem_limit_bytes=vmem_limit),
        cost_estimate=pl.CostEstimate(flops=int(flops),
                                      transcendentals=int(transcendentals),
                                      bytes_accessed=int(bytes_accessed)),
    )(*ins)
    return out[0, 0]


def init_params(key, dim, hid, k):
    """Deterministic synthetic parameters (PyTorch conv layout: (out, in))."""
    ks = jax.random.split(key, 6)

    def u(kk, shape, fan_in):
        bound = 1.0 / jnp.sqrt(jnp.float32(fan_in))
        return jax.random.uniform(kk, shape, jnp.float32, -bound, bound)

    W1, b1 = u(ks[0], (hid, dim), dim), u(ks[1], (hid,), dim)
    W2, b2 = u(ks[2], (hid, hid), hid), u(ks[3], (hid,), hid)
    W3, b3 = u(ks[4], (k, hid), hid), u(ks[5], (k,), hid)
    g1, be1 = jnp.ones((hid,), jnp.float32), jnp.zeros((hid,), jnp.float32)
    g2, be2 = jnp.ones((hid,), jnp.float32), jnp.zeros((hid,), jnp.float32)
    return (W1, b1, g1, be1, W2, b2, g2, be2, W3, b3)


def ref_forward(feature, xyz, params):
    """Pure-JAX reference in PyTorch NCW layout (validation only)."""
    W1, b1, g1, be1, W2, b2, g2, be2, W3, b3 = params

    def conv(x, W, b):
        return jnp.einsum('oc,bcn->bon', W, x) + b[None, :, None]

    def bn(x, g, be, eps=1e-5):
        m = jnp.mean(x, axis=(0, 2), keepdims=True)
        v = jnp.mean((x - m) ** 2, axis=(0, 2), keepdims=True)
        return (x - m) / jnp.sqrt(v + eps) * g[None, :, None] + be[None, :, None]

    h = jnp.maximum(bn(conv(feature, W1, b1), g1, be1), 0.0)
    h = jnp.maximum(bn(conv(h, W2, b2), g2, be2), 0.0)
    log_score = conv(h, W3, b3)                         # (bs, K, N)
    score = jax.nn.softmax(log_score, axis=1)
    log_sm = jax.nn.log_softmax(log_score, axis=1)
    pi = jnp.maximum(score.sum(-1), 1e-4)[:, None, :]
    K = log_score.shape[1]
    eye = jnp.eye(K)[None]

    def regular(center, reg=1e-4):
        return reg * jnp.mean(
            jnp.abs(jnp.einsum('bdm,bdn->bmn', center, center) - eye))

    def dis_assign(x, y, tau=0.01):
        src = jnp.swapaxes(x, -1, -2)
        dst = jnp.swapaxes(y, -1, -2)
        cost = (jnp.sum(src ** 2, -1, keepdims=True)
                + jnp.sum(dst ** 2, -1)[:, None, :]
                - 2.0 * jnp.einsum('bnd,bkd->bnk', src, dst))
        cost = jnp.mean(cost, -1, keepdims=True) - cost
        gamma = jax.nn.softmax(cost / tau, axis=-1)
        return jnp.swapaxes(gamma, -1, -2)

    mu_xyz = jnp.einsum('bkn,bdn->bdk', score, xyz) / pi
    reg_xyz = 0.001 * regular(mu_xyz)
    assign_xyz = dis_assign(xyz, mu_xyz)

    mu_fea = jnp.einsum('bkn,bdn->bdk', score, feature) / pi
    n_feature = feature / jnp.maximum(
        jnp.linalg.norm(feature, axis=1, keepdims=True), 1e-12)
    n_mu = mu_fea / jnp.maximum(
        jnp.linalg.norm(mu_fea, axis=1, keepdims=True), 1e-12)
    reg_fea = regular(n_mu)
    assign_fea = dis_assign(n_feature, n_mu)

    loss_xyz = -jnp.mean(jnp.sum(assign_xyz * log_sm, axis=1))
    loss_fea = -jnp.mean(jnp.sum(assign_fea * log_sm, axis=1))
    return loss_xyz + loss_fea + reg_fea + reg_xyz


if __name__ == "__main__":
    bs, dim, num, K = 2, 32, 16, 8
    hid = dim // 2

    key = jax.random.PRNGKey(0)
    kf, kx, kp = jax.random.split(key, 3)
    feature = jax.random.normal(kf, (bs, dim, num), jnp.float32)
    xyz = jax.random.normal(kx, (bs, 3, num), jnp.float32)
    params = init_params(kp, dim, hid, K)

    ref = ref_forward(feature, xyz, params)

    # precise path (f32 MXU, exact reciprocals): the strict numerical check
    loss_f32 = jax.block_until_ready(
        pointcluds_forward(feature, xyz, params,
                           mxu_dtype=jnp.float32, approx_recip=False))
    assert jnp.isfinite(loss_f32), loss_f32
    assert jnp.allclose(loss_f32, ref, rtol=2e-3, atol=2e-4), (float(loss_f32), float(ref))

    # production path (bf16 MXU inputs, EUP approx reciprocals): sanity check only
    loss_bf16 = jax.block_until_ready(pointcluds_forward(feature, xyz, params))
    assert jnp.isfinite(loss_bf16), loss_bf16
    assert jnp.allclose(loss_bf16, ref, rtol=1e-1, atol=1e-2), (float(loss_bf16), float(ref))

    print("KERNEL_OK")
</pallas_src>

<mosaic_0001>
module attributes {stable_mosaic.version = 11 : i64} {
  func.func @kernel(%arg0: i32, %arg1: i32, %arg2: i32, %arg3: memref<1x32x16xf32, #tpu.memory_space<vmem>>, %arg4: memref<1x3x16xf32, #tpu.memory_space<vmem>>, %arg5: memref<16x32xf32, #tpu.memory_space<vmem>>, %arg6: memref<16x1xf32, #tpu.memory_space<vmem>>, %arg7: memref<16x1xf32, #tpu.memory_space<vmem>>, %arg8: memref<16x1xf32, #tpu.memory_space<vmem>>, %arg9: memref<16x16xf32, #tpu.memory_space<vmem>>, %arg10: memref<16x1xf32, #tpu.memory_space<vmem>>, %arg11: memref<16x1xf32, #tpu.memory_space<vmem>>, %arg12: memref<16x1xf32, #tpu.memory_space<vmem>>, %arg13: memref<8x16xf32, #tpu.memory_space<vmem>>, %arg14: memref<8x1xf32, #tpu.memory_space<vmem>>, %arg15: memref<1x1xf32, #tpu.memory_space<vmem>>, %arg16: memref<16x1xf32, #tpu.memory_space<vmem>>, %arg17: memref<16x1xf32, #tpu.memory_space<vmem>>, %arg18: memref<16x1xf32, #tpu.memory_space<vmem>>, %arg19: memref<16x1xf32, #tpu.memory_space<vmem>>, %arg20: memref<2x1x8xf32, #tpu.memory_space<vmem>>, %arg21: memref<2x3x8xf32, #tpu.memory_space<vmem>>, %arg22: memref<2x32x8xf32, #tpu.memory_space<vmem>>, %arg23: memref<1x1xf32, #tpu.memory_space<vmem>>) attributes {dimension_semantics = [#tpu.dimension_semantics<arbitrary>, #tpu.dimension_semantics<arbitrary>, #tpu.dimension_semantics<arbitrary>], iteration_bounds = array<i64: 4, 2, 1>, scalar_prefetch = 0 : i64, scratch_operands = 8 : i64, tpu.core_type = #tpu.core_type<tc>, window_params = [{transform_indices = @transform_0, window_bounds = array<i64: 1, 32, 16>}, {transform_indices = @transform_1, window_bounds = array<i64: 1, 3, 16>}, {pipeline_mode = #tpu.pipeline_mode<synchronous>, transform_indices = @transform_2, window_bounds = array<i64: 16, 32>}, {pipeline_mode = #tpu.pipeline_mode<synchronous>, transform_indices = @transform_3, window_bounds = array<i64: 16, 1>}, {pipeline_mode = #tpu.pipeline_mode<synchronous>, transform_indices = @transform_4, window_bounds = array<i64: 16, 1>}, {pipeline_mode = #tpu.pipeline_mode<synchronous>, transform_indices = @transform_5, window_bounds = array<i64: 16, 1>}, {pipeline_mode = #tpu.pipeline_mode<synchronous>, transform_indices = @transform_6, window_bounds = array<i64: 16, 16>}, {pipeline_mode = #tpu.pipeline_mode<synchronous>, transform_indices = @transform_7, window_bounds = array<i64: 16, 1>}, {pipeline_mode = #tpu.pipeline_mode<synchronous>, transform_indices = @transform_8, window_bounds = array<i64: 16, 1>}, {pipeline_mode = #tpu.pipeline_mode<synchronous>, transform_indices = @transform_9, window_bounds = array<i64: 16, 1>}, {pipeline_mode = #tpu.pipeline_mode<synchronous>, transform_indices = @transform_10, window_bounds = array<i64: 8, 16>}, {pipeline_mode = #tpu.pipeline_mode<synchronous>, transform_indices = @transform_11, window_bounds = array<i64: 8, 1>}, {pipeline_mode = #tpu.pipeline_mode<synchronous>, transform_indices = @transform_12, window_bounds = array<i64: 1, 1>}]} {
    %c0 = arith.constant 0 : index
    %c0_0 = arith.constant 0 : index
    %c0_1 = arith.constant 0 : index
    %0 = vector.load %arg3[%c0, %c0_0, %c0_1] : memref<1x32x16xf32, #tpu.memory_space<vmem>>, vector<1x32x16xf32>
    %1 = vector.shape_cast %0 : vector<1x32x16xf32> to vector<32x16xf32>
    %c0_i32 = arith.constant 0 : i32
    %2 = arith.cmpi eq, %arg0, %c0_i32 : i32
    %c0_i32_2 = arith.constant 0 : i32
    %3 = arith.cmpi eq, %arg1, %c0_i32_2 : i32
    %4 = arith.andi %2, %3 : i1
    %c0_i32_3 = arith.constant 0 : i32
    %5 = arith.cmpi eq, %arg2, %c0_i32_3 : i32
    %6 = arith.andi %4, %5 : i1
    %7 = arith.extui %6 : i1 to i32
    %c0_i32_4 = arith.constant 0 : i32
    %8 = arith.cmpi ne, %7, %c0_i32_4 : i32
    scf.if %8 {
      %cst = arith.constant 0.000000e+00 : f32
      %21 = vector.broadcast %cst : f32 to vector<16x1xf32>
      %c0_10 = arith.constant 0 : index
      %c0_11 = arith.constant 0 : index
      %22 = vector.load %arg16[%c0_10, %c0_11] : memref<16x1xf32, #tpu.memory_space<vmem>>, vector<16x1xf32>
      tpu.vector_store %arg16[%c0_10, %c0_11], %21 {strides = array<i32>} : memref<16x1xf32, #tpu.memory_space<vmem>>, vector<16x1xf32>,
      %cst_12 = arith.constant 0.000000e+00 : f32
      %23 = vector.broadcast %cst_12 : f32 to vector<16x1xf32>
      %c0_13 = arith.constant 0 : index
      %c0_14 = arith.constant 0 : index
      %24 = vector.load %arg17[%c0_13, %c0_14] : memref<16x1xf32, #tpu.memory_space<vmem>>, vector<16x1xf32>
      tpu.vector_store %arg17[%c0_13, %c0_14], %23 {strides = array<i32>} : memref<16x1xf32, #tpu.memory_space<vmem>>, vector<16x1xf32>,
      %cst_15 = arith.constant 0.000000e+00 : f32
      %25 = vector.broadcast %cst_15 : f32 to vector<16x1xf32>
      %c0_16 = arith.constant 0 : index
      %c0_17 = arith.constant 0 : index
      %26 = vector.load %arg18[%c0_16, %c0_17] : memref<16x1xf32, #tpu.memory_space<vmem>>, vector<16x1xf32>
      tpu.vector_store %arg18[%c0_16, %c0_17], %25 {strides = array<i32>} : memref<16x1xf32, #tpu.memory_space<vmem>>, vector<16x1xf32>,
      %cst_18 = arith.constant 0.000000e+00 : f32
      %27 = vector.broadcast %cst_18 : f32 to vector<16x1xf32>
      %c0_19 = arith.constant 0 : index
      %c0_20 = arith.constant 0 : index
      %28 = vector.load %arg19[%c0_19, %c0_20] : memref<16x1xf32, #tpu.memory_space<vmem>>, vector<16x1xf32>
      tpu.vector_store %arg19[%c0_19, %c0_20], %27 {strides = array<i32>} : memref<16x1xf32, #tpu.memory_space<vmem>>, vector<16x1xf32>,
      %cst_21 = arith.constant 0.000000e+00 : f32
      %29 = vector.broadcast %cst_21 : f32 to vector<2x1x8xf32>
      %c0_22 = arith.constant 0 : index
      %c0_23 = arith.constant 0 : index
      %c0_24 = arith.constant 0 : index
      %30 = vector.load %arg20[%c0_22, %c0_23, %c0_24] : memref<2x1x8xf32, #tpu.memory_space<vmem>>, vector<2x1x8xf32>
      tpu.vector_store %arg20[%c0_22, %c0_23, %c0_24], %29 {strides = array<i32>} : memref<2x1x8xf32, #tpu.memory_space<vmem>>, vector<2x1x8xf32>,
      %cst_25 = arith.constant 0.000000e+00 : f32
      %31 = vector.broadcast %cst_25 : f32 to vector<2x3x8xf32>
      %c0_26 = arith.constant 0 : index
      %c0_27 = arith.constant 0 : index
      %c0_28 = arith.constant 0 : index
      %32 = vector.load %arg21[%c0_26, %c0_27, %c0_28] : memref<2x3x8xf32, #tpu.memory_space<vmem>>, vector<2x3x8xf32>
      tpu.vector_store %arg21[%c0_26, %c0_27, %c0_28], %31 {strides = array<i32>} : memref<2x3x8xf32, #tpu.memory_space<vmem>>, vector<2x3x8xf32>,
      %cst_29 = arith.constant 0.000000e+00 : f32
      %33 = vector.broadcast %cst_29 : f32 to vector<2x32x8xf32>
      %c0_30 = arith.constant 0 : index
      %c0_31 = arith.constant 0 : index
      %c0_32 = arith.constant 0 : index
      %34 = vector.load %arg22[%c0_30, %c0_31, %c0_32] : memref<2x32x8xf32, #tpu.memory_space<vmem>>, vector<2x32x8xf32>
      tpu.vector_store %arg22[%c0_30, %c0_31, %c0_32], %33 {strides = array<i32>} : memref<2x32x8xf32, #tpu.memory_space<vmem>>, vector<2x32x8xf32>,
      %cst_33 = arith.constant 0.000000e+00 : f32
      %35 = vector.broadcast %cst_33 : f32 to vector<1x1xf32>
      %c0_34 = arith.constant 0 : index
      %c0_35 = arith.constant 0 : index
      %36 = vector.load %arg23[%c0_34, %c0_35] : memref<1x1xf32, #tpu.memory_space<vmem>>, vector<1x1xf32>
      tpu.vector_store %arg23[%c0_34, %c0_35], %35 {strides = array<i32>} : memref<1x1xf32, #tpu.memory_space<vmem>>, vector<1x1xf32>,
    } else {
    }
    %c0_i32_5 = arith.constant 0 : i32
    %9 = arith.cmpi eq, %arg0, %c0_i32_5 : i32
    %10 = arith.extui %9 : i1 to i32
    %c0_i32_6 = arith.constant 0 : i32
    %11 = arith.cmpi ne, %10, %c0_i32_6 : i32
    scf.if %11 {
      %c0_10 = arith.constant 0 : index
      %c0_11 = arith.constant 0 : index
      %21 = vector.load %arg5[%c0_10, %c0_11] : memref<16x32xf32, #tpu.memory_space<vmem>>, vector<16x32xf32>
      %cst = arith.constant dense<0.000000e+00> : vector<16x16xf32>
      %22 = tpu.matmul %21, %1, %cst {dimension_numbers = #tpu.dot_dimension_numbers<[1], [0], [0], [1], [0, 0, 1, 1], [], []>} : vector<16x32xf32>, vector<32x16xf32>, vector<16x16xf32> -> vector<16x16xf32>
      %c0_12 = arith.constant 0 : index
      %c0_13 = arith.constant 0 : index
      %23 = vector.load %arg6[%c0_12, %c0_13] : memref<16x1xf32, #tpu.memory_space<vmem>>, vector<16x1xf32>
      %24 = vector.broadcast %23 : vector<16x1xf32> to vector<16x16xf32>
      %25 = arith.addf %22, %24 : vector<16x16xf32>
      %c0_14 = arith.constant 0 : index
      %c0_15 = arith.constant 0 : index
      %26 = vector.load %arg16[%c0_14, %c0_15] : memref<16x1xf32, #tpu.memory_space<vmem>>, vector<16x1xf32>
      %cst_16 = arith.constant dense<0.000000e+00> : vector<16xf32>
      %27 = vector.multi_reduction <add>, %25, %cst_16 [1] : vector<16x16xf32> to vector<16xf32>
      %28 = vector.shape_cast %27 : vector<16xf32> to vector<16x1xf32>
      %29 = arith.addf %26, %28 : vector<16x1xf32>
      %c0_17 = arith.constant 0 : index
      %c0_18 = arith.constant 0 : index
      %30 = vector.load %arg16[%c0_17, %c0_18] : memref<16x1xf32, #tpu.memory_space<vmem>>, vector<16x1xf32>
      tpu.vector_store %arg16[%c0_17, %c0_18], %29 {strides = array<i32>} : memref<16x1xf32, #tpu.memory_space<vmem>>, vector<16x1xf32>,
      %c0_19 = arith.constant 0 : index
      %c0_20 = arith.constant 0 : index
      %31 = vector.load %arg17[%c0_19, %c0_20] : memref<16x1xf32, #tpu.memory_space<vmem>>, vector<16x1xf32>
      %32 = arith.mulf %25, %25 : vector<16x16xf32>
      %cst_21 = arith.constant dense<0.000000e+00> : vector<16xf32>
      %33 = vector.multi_reduction <add>, %32, %cst_21 [1] : vector<16x16xf32> to vector<16xf32>
      %34 = vector.shape_cast %33 : vector<16xf32> to vector<16x1xf32>
      %35 = arith.addf %31, %34 : vector<16x1xf32>
      %c0_22 = arith.constant 0 : index
      %c0_23 = arith.constant 0 : index
      %36 = vector.load %arg17[%c0_22, %c0_23] : memref<16x1xf32, #tpu.memory_space<vmem>>, vector<16x1xf32>
      tpu.vector_store %arg17[%c0_22, %c0_23], %35 {strides = array<i32>} : memref<16x1xf32, #tpu.memory_space<vmem>>, vector<16x1xf32>,
    } else {
    }
    %c1_i32 = arith.constant 1 : i32
    %12 = arith.cmpi eq, %arg0, %c1_i32 : i32
    %13 = arith.extui %12 : i1 to i32
    %c0_i32_7 = arith.constant 0 : i32
    %14 = arith.cmpi ne, %13, %c0_i32_7 : i32
    scf.if %14 {
      %c0_10 = arith.constant 0 : index
      %c0_11 = arith.constant 0 : index
      %21 = vector.load %arg5[%c0_10, %c0_11] : memref<16x32xf32, #tpu.memory_space<vmem>>, vector<16x32xf32>
      %cst = arith.constant dense<0.000000e+00> : vector<16x16xf32>
      %22 = tpu.matmul %21, %1, %cst {dimension_numbers = #tpu.dot_dimension_numbers<[1], [0], [0], [1], [0, 0, 1, 1], [], []>} : vector<16x32xf32>, vector<32x16xf32>, vector<16x16xf32> -> vector<16x16xf32>
      %c0_12 = arith.constant 0 : index
      %c0_13 = arith.constant 0 : index
      %23 = vector.load %arg6[%c0_12, %c0_13] : memref<16x1xf32, #tpu.memory_space<vmem>>, vector<16x1xf32>
      %24 = vector.broadcast %23 : vector<16x1xf32> to vector<16x16xf32>
      %25 = arith.addf %22, %24 : vector<16x16xf32>
      %c0_14 = arith.constant 0 : index
      %c0_15 = arith.constant 0 : index
      %26 = vector.load %arg16[%c0_14, %c0_15] : memref<16x1xf32, #tpu.memory_space<vmem>>, vector<16x1xf32>
      %cst_16 = arith.constant 3.125000e-02 : f32
      %27 = vector.broadcast %cst_16 : f32 to vector<16x1xf32>
      %28 = arith.mulf %26, %27 : vector<16x1xf32>
      %c0_17 = arith.constant 0 : index
      %c0_18 = arith.constant 0 : index
      %29 = vector.load %arg17[%c0_17, %c0_18] : memref<16x1xf32, #tpu.memory_space<vmem>>, vector<16x1xf32>
      %cst_19 = arith.constant 3.125000e-02 : f32
      %30 = vector.broadcast %cst_19 : f32 to vector<16x1xf32>
      %31 = arith.mulf %29, %30 : vector<16x1xf32>
      %32 = arith.mulf %28, %28 : vector<16x1xf32>
      %33 = arith.subf %31, %32 : vector<16x1xf32>
      %cst_20 = arith.constant 9.99999974E-6 : f32
      %34 = vector.broadcast %cst_20 : f32 to vector<16x1xf32>
      %35 = arith.addf %33, %34 : vector<16x1xf32>
      %36 = math.rsqrt %35 : vector<16x1xf32>
      %c0_21 = arith.constant 0 : index
      %c0_22 = arith.constant 0 : index
      %37 = vector.load %arg7[%c0_21, %c0_22] : memref<16x1xf32, #tpu.memory_space<vmem>>, vector<16x1xf32>
      %38 = arith.mulf %36, %37 : vector<16x1xf32>
      %39 = vector.broadcast %28 : vector<16x1xf32> to vector<16x16xf32>
      %40 = arith.subf %25, %39 : vector<16x16xf32>
      %41 = vector.broadcast %38 : vector<16x1xf32> to vector<16x16xf32>
      %42 = arith.mulf %40, %41 : vector<16x16xf32>
      %c0_23 = arith.constant 0 : index
      %c0_24 = arith.constant 0 : index
      %43 = vector.load %arg8[%c0_23, %c0_24] : memref<16x1xf32, #tpu.memory_space<vmem>>, vector<16x1xf32>
      %44 = vector.broadcast %43 : vector<16x1xf32> to vector<16x16xf32>
      %45 = arith.addf %42, %44 : vector<16x16xf32>
      %cst_25 = arith.constant 0.000000e+00 : f32
      %46 = vector.broadcast %cst_25 : f32 to vector<16x16xf32>
      %47 = arith.maximumf %45, %46 : vector<16x16xf32>
      %c0_26 = arith.constant 0 : index
      %c0_27 = arith.constant 0 : index
      %48 = vector.load %arg9[%c0_26, %c0_27] : memref<16x16xf32, #tpu.memory_space<vmem>>, vector<16x16xf32>
      %cst_28 = arith.constant dense<0.000000e+00> : vector<16x16xf32>
      %49 = tpu.matmul %48, %47, %cst_28 {dimension_numbers = #tpu.dot_dimension_numbers<[1], [0], [0], [1], [0, 0, 1, 1], [], []>} : vector<16x16xf32>, vector<16x16xf32>, vector<16x16xf32> -> vector<16x16xf32>
      %c0_29 = arith.constant 0 : index
      %c0_30 = arith.constant 0 : index
      %50 = vector.load %arg10[%c0_29, %c0_30] : memref<16x1xf32, #tpu.memory_space<vmem>>, vector<16x1xf32>
      %51 = vector.broadcast %50 : vector<16x1xf32> to vector<16x16xf32>
      %52 = arith.addf %49, %51 : vector<16x16xf32>
      %c0_31 = arith.constant 0 : index
      %c0_32 = arith.constant 0 : index
      %53 = vector.load %arg18[%c0_31, %c0_32] : memref<16x1xf32, #tpu.memory_space<vmem>>, vector<16x1xf32>
      %cst_33 = arith.constant dense<0.000000e+00> : vector<16xf32>
      %54 = vector.multi_reduction <add>, %52, %cst_33 [1] : vector<16x16xf32> to vector<16xf32>
      %55 = vector.shape_cast %54 : vector<16xf32> to vector<16x1xf32>
      %56 = arith.addf %53, %55 : vector<16x1xf32>
      %c0_34 = arith.constant 0 : index
      %c0_35 = arith.constant 0 : index
      %57 = vector.load %arg18[%c0_34, %c0_35] : memref<16x1xf32, #tpu.memory_space<vmem>>, vector<16x1xf32>
      tpu.vector_store %arg18[%c0_34, %c0_35], %56 {strides = array<i32>} : memref<16x1xf32, #tpu.memory_space<vmem>>, vector<16x1xf32>,
      %c0_36 = arith.constant 0 : index
      %c0_37 = arith.constant 0 : index
      %58 = vector.load %arg19[%c0_36, %c0_37] : memref<16x1xf32, #tpu.memory_space<vmem>>, vector<16x1xf32>
      %59 = arith.mulf %52, %52 : vector<16x16xf32>
      %cst_38 = arith.constant dense<0.000000e+00> : vector<16xf32>
      %60 = vector.multi_reduction <add>, %59, %cst_38 [1] : vector<16x16xf32> to vector<16xf32>
      %61 = vector.shape_cast %60 : vector<16xf32> to vector<16x1xf32>
      %62 = arith.addf %58, %61 : vector<16x1xf32>
      %c0_39 = arith.constant 0 : index
      %c0_40 = arith.constant 0 : index
      %63 = vector.load %arg19[%c0_39, %c0_40] : memref<16x1xf32, #tpu.memory_space<vmem>>, vector<16x1xf32>
      tpu.vector_store %arg19[%c0_39, %c0_40], %62 {strides = array<i32>} : memref<16x1xf32, #tpu.memory_space<vmem>>, vector<16x1xf32>,
    } else {
    }
    %c2_i32 = arith.constant 2 : i32
    %15 = arith.cmpi eq, %arg0, %c2_i32 : i32
    %16 = arith.extui %15 : i1 to i32
    %c0_i32_8 = arith.constant 0 : i32
    %17 = arith.cmpi ne, %16, %c0_i32_8 : i32
    scf.if %17 {
      %c0_10 = arith.constant 0 : index
      %c0_11 = arith.constant 0 : index
      %21 = vector.load %arg5[%c0_10, %c0_11] : memref<16x32xf32, #tpu.memory_space<vmem>>, vector<16x32xf32>
      %cst = arith.constant dense<0.000000e+00> : vector<16x16xf32>
      %22 = tpu.matmul %21, %1, %cst {dimension_numbers = #tpu.dot_dimension_numbers<[1], [0], [0], [1], [0, 0, 1, 1], [], []>} : vector<16x32xf32>, vector<32x16xf32>, vector<16x16xf32> -> vector<16x16xf32>
      %c0_12 = arith.constant 0 : index
      %c0_13 = arith.constant 0 : index
      %23 = vector.load %arg6[%c0_12, %c0_13] : memref<16x1xf32, #tpu.memory_space<vmem>>, vector<16x1xf32>
      %24 = vector.broadcast %23 : vector<16x1xf32> to vector<16x16xf32>
      %25 = arith.addf %22, %24 : vector<16x16xf32>
      %c0_14 = arith.constant 0 : index
      %c0_15 = arith.constant 0 : index
      %26 = vector.load %arg16[%c0_14, %c0_15] : memref<16x1xf32, #tpu.memory_space<vmem>>, vector<16x1xf32>
      %cst_16 = arith.constant 3.125000e-02 : f32
      %27 = vector.broadcast %cst_16 : f32 to vector<16x1xf32>
      %28 = arith.mulf %26, %27 : vector<16x1xf32>
      %c0_17 = arith.constant 0 : index
      %c0_18 = arith.constant 0 : index
      %29 = vector.load %arg17[%c0_17, %c0_18] : memref<16x1xf32, #tpu.memory_space<vmem>>, vector<16x1xf32>
      %cst_19 = arith.constant 3.125000e-02 : f32
      %30 = vector.broadcast %cst_19 : f32 to vector<16x1xf32>
      %31 = arith.mulf %29, %30 : vector<16x1xf32>
      %32 = arith.mulf %28, %28 : vector<16x1xf32>
      %33 = arith.subf %31, %32 : vector<16x1xf32>
      %cst_20 = arith.constant 9.99999974E-6 : f32
      %34 = vector.broadcast %cst_20 : f32 to vector<16x1xf32>
      %35 = arith.addf %33, %34 : vector<16x1xf32>
      %36 = math.rsqrt %35 : vector<16x1xf32>
      %c0_21 = arith.constant 0 : index
      %c0_22 = arith.constant 0 : index
      %37 = vector.load %arg7[%c0_21, %c0_22] : memref<16x1xf32, #tpu.memory_space<vmem>>, vector<16x1xf32>
      %38 = arith.mulf %36, %37 : vector<16x1xf32>
      %39 = vector.broadcast %28 : vector<16x1xf32> to vector<16x16xf32>
      %40 = arith.subf %25, %39 : vector<16x16xf32>
      %41 = vector.broadcast %38 : vector<16x1xf32> to vector<16x16xf32>
      %42 = arith.mulf %40, %41 : vector<16x16xf32>
      %c0_23 = arith.constant 0 : index
      %c0_24 = arith.constant 0 : index
      %43 = vector.load %arg8[%c0_23, %c0_24] : memref<16x1xf32, #tpu.memory_space<vmem>>, vector<16x1xf32>
      %44 = vector.broadcast %43 : vector<16x1xf32> to vector<16x16xf32>
      %45 = arith.addf %42, %44 : vector<16x16xf32>
      %cst_25 = arith.constant 0.000000e+00 : f32
      %46 = vector.broadcast %cst_25 : f32 to vector<16x16xf32>
      %47 = arith.maximumf %45, %46 : vector<16x16xf32>
      %c0_26 = arith.constant 0 : index
      %c0_27 = arith.constant 0 : index
      %48 = vector.load %arg9[%c0_26, %c0_27] : memref<16x16xf32, #tpu.memory_space<vmem>>, vector<16x16xf32>
      %cst_28 = arith.constant dense<0.000000e+00> : vector<16x16xf32>
      %49 = tpu.matmul %48, %47, %cst_28 {dimension_numbers = #tpu.dot_dimension_numbers<[1], [0], [0], [1], [0, 0, 1, 1], [], []>} : vector<16x16xf32>, vector<16x16xf32>, vector<16x16xf32> -> vector<16x16xf32>
      %c0_29 = arith.constant 0 : index
      %c0_30 = arith.constant 0 : index
      %50 = vector.load %arg10[%c0_29, %c0_30] : memref<16x1xf32, #tpu.memory_space<vmem>>, vector<16x1xf32>
      %51 = vector.broadcast %50 : vector<16x1xf32> to vector<16x16xf32>
      %52 = arith.addf %49, %51 : vector<16x16xf32>
      %c0_31 = arith.constant 0 : index
      %c0_32 = arith.constant 0 : index
      %53 = vector.load %arg18[%c0_31, %c0_32] : memref<16x1xf32, #tpu.memory_space<vmem>>, vector<16x1xf32>
      %cst_33 = arith.constant 3.125000e-02 : f32
      %54 = vector.broadcast %cst_33 : f32 to vector<16x1xf32>
      %55 = arith.mulf %53, %54 : vector<16x1xf32>
      %c0_34 = arith.constant 0 : index
      %c0_35 = arith.constant 0 : index
      %56 = vector.load %arg19[%c0_34, %c0_35] : memref<16x1xf32, #tpu.memory_space<vmem>>, vector<16x1xf32>
      %cst_36 = arith.constant 3.125000e-02 : f32
      %57 = vector.broadcast %cst_36 : f32 to vector<16x1xf32>
      %58 = arith.mulf %56, %57 : vector<16x1xf32>
      %59 = arith.mulf %55, %55 : vector<16x1xf32>
      %60 = arith.subf %58, %59 : vector<16x1xf32>
      %cst_37 = arith.constant 9.99999974E-6 : f32
      %61 = vector.broadcast %cst_37 : f32 to vector<16x1xf32>
      %62 = arith.addf %60, %61 : vector<16x1xf32>
      %63 = math.rsqrt %62 : vector<16x1xf32>
      %c0_38 = arith.constant 0 : index
      %c0_39 = arith.constant 0 : index
      %64 = vector.load %arg11[%c0_38, %c0_39] : memref<16x1xf32, #tpu.memory_space<vmem>>, vector<16x1xf32>
      %65 = arith.mulf %63, %64 : vector<16x1xf32>
      %66 = vector.broadcast %55 : vector<16x1xf32> to vector<16x16xf32>
      %67 = arith.subf %52, %66 : vector<16x16xf32>
      %68 = vector.broadcast %65 : vector<16x1xf32> to vector<16x16xf32>
      %69 = arith.mulf %67, %68 : vector<16x16xf32>
      %c0_40 = arith.constant 0 : index
      %c0_41 = arith.constant 0 : index
      %70 = vector.load %arg12[%c0_40, %c0_41] : memref<16x1xf32, #tpu.memory_space<vmem>>, vector<16x1xf32>
      %71 = vector.broadcast %70 : vector<16x1xf32> to vector<16x16xf32>
      %72 = arith.addf %69, %71 : vector<16x16xf32>
      %cst_42 = arith.constant 0.000000e+00 : f32
      %73 = vector.broadcast %cst_42 : f32 to vector<16x16xf32>
      %74 = arith.maximumf %72, %73 : vector<16x16xf32>
      %c0_43 = arith.constant 0 : index
      %c0_44 = arith.constant 0 : index
      %75 = vector.load %arg13[%c0_43, %c0_44] : memref<8x16xf32, #tpu.memory_space<vmem>>, vector<8x16xf32>
      %cst_45 = arith.constant dense<0.000000e+00> : vector<8x16xf32>
      %76 = tpu.matmul %75, %74, %cst_45 {dimension_numbers = #tpu.dot_dimension_numbers<[1], [0], [0], [1], [0, 0, 1, 1], [], []>} : vector<8x16xf32>, vector<16x16xf32>, vector<8x16xf32> -> vector<8x16xf32>
      %c0_46 = arith.constant 0 : index
      %c0_47 = arith.constant 0 : index
      %77 = vector.load %arg14[%c0_46, %c0_47] : memref<8x1xf32, #tpu.memory_space<vmem>>, vector<8x1xf32>
      %78 = vector.broadcast %77 : vector<8x1xf32> to vector<8x16xf32>
      %79 = arith.addf %76, %78 : vector<8x16xf32>
      %cst_48 = arith.constant dense<0xFF800000> : vector<16xf32>
      %80 = vector.multi_reduction <maximumf>, %79, %cst_48 [0] : vector<8x16xf32> to vector<16xf32>
      %81 = vector.shape_cast %80 : vector<16xf32> to vector<1x16xf32>
      %82 = vector.broadcast %81 : vector<1x16xf32> to vector<8x16xf32>
      %83 = arith.subf %79, %82 : vector<8x16xf32>
      %84 = math.exp %83 : vector<8x16xf32>
      %cst_49 = arith.constant dense<0.000000e+00> : vector<16xf32>
      %85 = vector.multi_reduction <add>, %84, %cst_49 [0] : vector<8x16xf32> to vector<16xf32>
      %86 = vector.shape_cast %85 : vector<16xf32> to vector<1x16xf32>
      %87 = tpu.reciprocal %86 : vector<1x16xf32> -> vector<1x16xf32>
      %88 = vector.broadcast %87 : vector<1x16xf32> to vector<8x16xf32>
      %89 = arith.mulf %84, %88 : vector<8x16xf32>
      %90 = tpu.transpose %89, [1, 0] : vector<8x16xf32> -> vector<16x8xf32>
      %91 = arith.index_cast %arg1 : i32 to index
      %c0_50 = arith.constant 0 : index
      %c0_51 = arith.constant 0 : index
      %92 = vector.load %arg20[%91, %c0_50, %c0_51] : memref<2x1x8xf32, #tpu.memory_space<vmem>>, vector<1x1x8xf32>
      %93 = vector.shape_cast %92 : vector<1x1x8xf32> to vector<1x8xf32>
      %cst_52 = arith.constant dense<0.000000e+00> : vector<8xf32>
      %94 = vector.multi_reduction <add>, %90, %cst_52 [0] : vector<16x8xf32> to vector<8xf32>
      %95 = vector.shape_cast %94 : vector<8xf32> to vector<1x8xf32>
      %96 = arith.addf %93, %95 : vector<1x8xf32>
      %97 = arith.index_cast %arg1 : i32 to index
      %c0_53 = arith.constant 0 : index
      %c0_54 = arith.constant 0 : index
      %98 = vector.load %arg20[%97, %c0_53, %c0_54] : memref<2x1x8xf32, #tpu.memory_space<vmem>>, vector<1x1x8xf32>
      %99 = vector.shape_cast %98 : vector<1x1x8xf32> to vector<1x8xf32>
      %100 = vector.shape_cast %96 : vector<1x8xf32> to vector<1x1x8xf32>
      tpu.vector_store %arg20[%97, %c0_53, %c0_54], %100 {strides = array<i32>} : memref<2x1x8xf32, #tpu.memory_space<vmem>>, vector<1x1x8xf32>,
      %c0_55 = arith.constant 0 : index
      %c0_56 = arith.constant 0 : index
      %c0_57 = arith.constant 0 : index
      %101 = vector.load %arg4[%c0_55, %c0_56, %c0_57] : memref<1x3x16xf32, #tpu.memory_space<vmem>>, vector<1x3x16xf32>
      %102 = vector.shape_cast %101 : vector<1x3x16xf32> to vector<3x16xf32>
      %103 = arith.index_cast %arg1 : i32 to index
      %c0_58 = arith.constant 0 : index
      %c0_59 = arith.constant 0 : index
      %104 = vector.load %arg21[%103, %c0_58, %c0_59] : memref<2x3x8xf32, #tpu.memory_space<vmem>>, vector<1x3x8xf32>
      %105 = vector.shape_cast %104 : vector<1x3x8xf32> to vector<3x8xf32>
      %cst_60 = arith.constant dense<0.000000e+00> : vector<3x8xf32>
      %106 = tpu.matmul %102, %90, %cst_60 {dimension_numbers = #tpu.dot_dimension_numbers<[1], [0], [0], [1], [0, 0, 1, 1], [], []>} : vector<3x16xf32>, vector<16x8xf32>, vector<3x8xf32> -> vector<3x8xf32>
      %107 = arith.addf %105, %106 : vector<3x8xf32>
      %108 = arith.index_cast %arg1 : i32 to index
      %c0_61 = arith.constant 0 : index
      %c0_62 = arith.constant 0 : index
      %109 = vector.load %arg21[%108, %c0_61, %c0_62] : memref<2x3x8xf32, #tpu.memory_space<vmem>>, vector<1x3x8xf32>
      %110 = vector.shape_cast %109 : vector<1x3x8xf32> to vector<3x8xf32>
      %111 = vector.shape_cast %107 : vector<3x8xf32> to vector<1x3x8xf32>
      tpu.vector_store %arg21[%108, %c0_61, %c0_62], %111 {strides = array<i32>} : memref<2x3x8xf32, #tpu.memory_space<vmem>>, vector<1x3x8xf32>,
      %112 = arith.index_cast %arg1 : i32 to index
      %c0_63 = arith.constant 0 : index
      %c0_64 = arith.constant 0 : index
      %113 = vector.load %arg22[%112, %c0_63, %c0_64] : memref<2x32x8xf32, #tpu.memory_space<vmem>>, vector<1x32x8xf32>
      %114 = vector.shape_cast %113 : vector<1x32x8xf32> to vector<32x8xf32>
      %cst_65 = arith.constant dense<0.000000e+00> : vector<32x8xf32>
      %115 = tpu.matmul %1, %90, %cst_65 {dimension_numbers = #tpu.dot_dimension_numbers<[1], [0], [0], [1], [0, 0, 1, 1], [], []>} : vector<32x16xf32>, vector<16x8xf32>, vector<32x8xf32> -> vector<32x8xf32>
      %116 = arith.addf %114, %115 : vector<32x8xf32>
      %117 = arith.index_cast %arg1 : i32 to index
      %c0_66 = arith.constant 0 : index
      %c0_67 = arith.constant 0 : index
      %118 = vector.load %arg22[%117, %c0_66, %c0_67] : memref<2x32x8xf32, #tpu.memory_space<vmem>>, vector<1x32x8xf32>
      %119 = vector.shape_cast %118 : vector<1x32x8xf32> to vector<32x8xf32>
      %120 = vector.shape_cast %116 : vector<32x8xf32> to vector<1x32x8xf32>
      tpu.vector_store %arg22[%117, %c0_66, %c0_67], %120 {strides = array<i32>} : memref<2x32x8xf32, #tpu.memory_space<vmem>>, vector<1x32x8xf32>,
    } else {
    }
    %c3_i32 = arith.constant 3 : i32
    %18 = arith.cmpi eq, %arg0, %c3_i32 : i32
    %19 = arith.extui %18 : i1 to i32
    %c0_i32_9 = arith.constant 0 : i32
    %20 = arith.cmpi ne, %19, %c0_i32_9 : i32
    scf.if %20 {
      %21 = arith.index_cast %arg1 : i32 to index
      %c0_10 = arith.constant 0 : index
      %c0_11 = arith.constant 0 : index
      %22 = vector.load %arg20[%21, %c0_10, %c0_11] : memref<2x1x8xf32, #tpu.memory_space<vmem>>, vector<1x1x8xf32>
      %23 = vector.shape_cast %22 : vector<1x1x8xf32> to vector<1x8xf32>
      %cst = arith.constant 9.99999974E-5 : f32
      %24 = vector.broadcast %cst : f32 to vector<1x8xf32>
      %25 = arith.maximumf %23, %24 : vector<1x8xf32>
      %cst_12 = arith.constant 1.000000e+00 : f32
      %26 = vector.broadcast %cst_12 : f32 to vector<1x8xf32>
      %27 = arith.divf %26, %25 : vector<1x8xf32>
      %28 = arith.index_cast %arg1 : i32 to index
      %c0_13 = arith.constant 0 : index
      %c0_14 = arith.constant 0 : index
      %29 = vector.load %arg21[%28, %c0_13, %c0_14] : memref<2x3x8xf32, #tpu.memory_space<vmem>>, vector<1x3x8xf32>
      %30 = vector.shape_cast %29 : vector<1x3x8xf32> to vector<3x8xf32>
      %31 = vector.broadcast %27 : vector<1x8xf32> to vector<3x8xf32>
      %32 = arith.mulf %30, %31 : vector<3x8xf32>
      %33 = arith.index_cast %arg1 : i32 to index
      %c0_15 = arith.constant 0 : index
      %c0_16 = arith.constant 0 : index
      %34 = vector.load %arg22[%33, %c0_15, %c0_16] : memref<2x32x8xf32, #tpu.memory_space<vmem>>, vector<1x32x8xf32>
      %35 = vector.shape_cast %34 : vector<1x32x8xf32> to vector<32x8xf32>
      %36 = vector.broadcast %27 : vector<1x8xf32> to vector<32x8xf32>
      %37 = arith.mulf %35, %36 : vector<32x8xf32>
      %38 = arith.mulf %37, %37 : vector<32x8xf32>
      %cst_17 = arith.constant dense<0.000000e+00> : vector<8xf32>
      %39 = vector.multi_reduction <add>, %38, %cst_17 [0] : vector<32x8xf32> to vector<8xf32>
      %40 = vector.shape_cast %39 : vector<8xf32> to vector<1x8xf32>
      %cst_18 = arith.constant 1.000000e-24 : f32
      %41 = vector.broadcast %cst_18 : f32 to vector<1x8xf32>
      %42 = arith.maximumf %40, %41 : vector<1x8xf32>
      %43 = math.rsqrt %42 : vector<1x8xf32>
      %44 = vector.broadcast %43 : vector<1x8xf32> to vector<32x8xf32>
      %45 = arith.mulf %37, %44 : vector<32x8xf32>
      %46 = tpu.transpose %45, [1, 0] : vector<32x8xf32> -> vector<8x32xf32>
      %47 = tpu.transpose %32, [1, 0] : vector<3x8xf32> -> vector<8x3xf32>
      %c0_i32_19 = arith.constant 0 : i32
      %48 = arith.cmpi eq, %arg2, %c0_i32_19 : i32
      %49 = arith.extui %48 : i1 to i32
      %c0_i32_20 = arith.constant 0 : i32
      %50 = arith.cmpi ne, %49, %c0_i32_20 : i32
      scf.if %50 {
        %214 = tpu.iota {dimensions = array<i32: 0>} : vector<8x8xi32>
        %215 = tpu.iota {dimensions = array<i32: 1>} : vector<8x8xi32>
        %216 = arith.cmpi eq, %214, %215 : vector<8x8xi32>
        %217 = arith.extui %216 : vector<8x8xi1> to vector<8x8xi32>
        %218 = arith.sitofp %217 : vector<8x8xi32> to vector<8x8xf32>
        %cst_93 = arith.constant dense<0.000000e+00> : vector<8x8xf32>
        %219 = tpu.matmul %46, %45, %cst_93 {dimension_numbers = #tpu.dot_dimension_numbers<[1], [0], [0], [1], [0, 0, 1, 1], [], []>} : vector<8x32xf32>, vector<32x8xf32>, vector<8x8xf32> -> vector<8x8xf32>
        %cst_94 = arith.constant dense<0.000000e+00> : vector<8x8xf32>
        %220 = tpu.matmul %47, %32, %cst_94 {dimension_numbers = #tpu.dot_dimension_numbers<[1], [0], [0], [1], [0, 0, 1, 1], [], []>} : vector<8x3xf32>, vector<3x8xf32>, vector<8x8xf32> -> vector<8x8xf32>
        %221 = arith.subf %219, %218 : vector<8x8xf32>
        %222 = math.absf %221 : vector<8x8xf32>
        %223 = vector.shape_cast %222 : vector<8x8xf32> to vector<1x8x8xf32>
        %cst_95 = arith.constant dense<0.000000e+00> : vector<1xf32>
        %224 = vector.multi_reduction <add>, %223, %cst_95 [1, 2] : vector<1x8x8xf32> to vector<1xf32>
        %225 = vector.shape_cast %224 : vector<1xf32> to vector<1x1x1xf32>
        %226 = vector.extract %225[0, 0, 0] : f32 from vector<1x1x1xf32>
        %cst_96 = arith.constant 6.400000e+01 : f32
        %227 = arith.divf %226, %cst_96 : f32
        %cst_97 = arith.constant 9.99999974E-5 : f32
        %228 = arith.mulf %cst_97, %227 : f32
        %229 = arith.subf %220, %218 : vector<8x8xf32>
        %230 = math.absf %229 : vector<8x8xf32>
        %231 = vector.shape_cast %230 : vector<8x8xf32> to vector<1x8x8xf32>
        %cst_98 = arith.constant dense<0.000000e+00> : vector<1xf32>
        %232 = vector.multi_reduction <add>, %231, %cst_98 [1, 2] : vector<1x8x8xf32> to vector<1xf32>
        %233 = vector.shape_cast %232 : vector<1xf32> to vector<1x1x1xf32>
        %234 = vector.extract %233[0, 0, 0] : f32 from vector<1x1x1xf32>
        %cst_99 = arith.constant 6.400000e+01 : f32
        %235 = arith.divf %234, %cst_99 : f32
        %cst_100 = arith.constant 1.000000e-07 : f32
        %236 = arith.mulf %cst_100, %235 : f32
        %237 = arith.addf %228, %236 : f32
        %c0_101 = arith.constant 0 : index
        %c0_102 = arith.constant 0 : index
        %238 = vector.load %arg23[%c0_101, %c0_102] : memref<1x1xf32, #tpu.memory_space<vmem>>, vector<1x1xf32>
        %cst_103 = arith.constant 5.000000e-01 : f32
        %239 = arith.mulf %237, %cst_103 : f32
        %240 = vector.broadcast %239 : f32 to vector<1x1xf32>
        %241 = arith.addf %238, %240 : vector<1x1xf32>
        %c0_104 = arith.constant 0 : index
        %c0_105 = arith.constant 0 : index
        %242 = vector.load %arg23[%c0_104, %c0_105] : memref<1x1xf32, #tpu.memory_space<vmem>>, vector<1x1xf32>
        tpu.vector_store %arg23[%c0_104, %c0_105], %241 {strides = array<i32>} : memref<1x1xf32, #tpu.memory_space<vmem>>, vector<1x1xf32>,
      } else {
      }
      %c0_21 = arith.constant 0 : index
      %c0_22 = arith.constant 0 : index
      %51 = vector.load %arg5[%c0_21, %c0_22] : memref<16x32xf32, #tpu.memory_space<vmem>>, vector<16x32xf32>
      %cst_23 = arith.constant dense<0.000000e+00> : vector<16x16xf32>
      %52 = tpu.matmul %51, %1, %cst_23 {dimension_numbers = #tpu.dot_dimension_numbers<[1], [0], [0], [1], [0, 0, 1, 1], [], []>} : vector<16x32xf32>, vector<32x16xf32>, vector<16x16xf32> -> vector<16x16xf32>
      %c0_24 = arith.constant 0 : index
      %c0_25 = arith.constant 0 : index
      %53 = vector.load %arg6[%c0_24, %c0_25] : memref<16x1xf32, #tpu.memory_space<vmem>>, vector<16x1xf32>
      %54 = vector.broadcast %53 : vector<16x1xf32> to vector<16x16xf32>
      %55 = arith.addf %52, %54 : vector<16x16xf32>
      %c0_26 = arith.constant 0 : index
      %c0_27 = arith.constant 0 : index
      %56 = vector.load %arg16[%c0_26, %c0_27] : memref<16x1xf32, #tpu.memory_space<vmem>>, vector<16x1xf32>
      %cst_28 = arith.constant 3.125000e-02 : f32
      %57 = vector.broadcast %cst_28 : f32 to vector<16x1xf32>
      %58 = arith.mulf %56, %57 : vector<16x1xf32>
      %c0_29 = arith.constant 0 : index
      %c0_30 = arith.constant 0 : index
      %59 = vector.load %arg17[%c0_29, %c0_30] : memref<16x1xf32, #tpu.memory_space<vmem>>, vector<16x1xf32>
      %cst_31 = arith.constant 3.125000e-02 : f32
      %60 = vector.broadcast %cst_31 : f32 to vector<16x1xf32>
      %61 = arith.mulf %59, %60 : vector<16x1xf32>
      %62 = arith.mulf %58, %58 : vector<16x1xf32>
      %63 = arith.subf %61, %62 : vector<16x1xf32>
      %cst_32 = arith.constant 9.99999974E-6 : f32
      %64 = vector.broadcast %cst_32 : f32 to vector<16x1xf32>
      %65 = arith.addf %63, %64 : vector<16x1xf32>
      %66 = math.rsqrt %65 : vector<16x1xf32>
      %c0_33 = arith.constant 0 : index
      %c0_34 = arith.constant 0 : index
      %67 = vector.load %arg7[%c0_33, %c0_34] : memref<16x1xf32, #tpu.memory_space<vmem>>, vector<16x1xf32>
      %68 = arith.mulf %66, %67 : vector<16x1xf32>
      %69 = vector.broadcast %58 : vector<16x1xf32> to vector<16x16xf32>
      %70 = arith.subf %55, %69 : vector<16x16xf32>
      %71 = vector.broadcast %68 : vector<16x1xf32> to vector<16x16xf32>
      %72 = arith.mulf %70, %71 : vector<16x16xf32>
      %c0_35 = arith.constant 0 : index
      %c0_36 = arith.constant 0 : index
      %73 = vector.load %arg8[%c0_35, %c0_36] : memref<16x1xf32, #tpu.memory_space<vmem>>, vector<16x1xf32>
      %74 = vector.broadcast %73 : vector<16x1xf32> to vector<16x16xf32>
      %75 = arith.addf %72, %74 : vector<16x16xf32>
      %cst_37 = arith.constant 0.000000e+00 : f32
      %76 = vector.broadcast %cst_37 : f32 to vector<16x16xf32>
      %77 = arith.maximumf %75, %76 : vector<16x16xf32>
      %c0_38 = arith.constant 0 : index
      %c0_39 = arith.constant 0 : index
      %78 = vector.load %arg9[%c0_38, %c0_39] : memref<16x16xf32, #tpu.memory_space<vmem>>, vector<16x16xf32>
      %cst_40 = arith.constant dense<0.000000e+00> : vector<16x16xf32>
      %79 = tpu.matmul %78, %77, %cst_40 {dimension_numbers = #tpu.dot_dimension_numbers<[1], [0], [0], [1], [0, 0, 1, 1], [], []>} : vector<16x16xf32>, vector<16x16xf32>, vector<16x16xf32> -> vector<16x16xf32>
      %c0_41 = arith.constant 0 : index
      %c0_42 = arith.constant 0 : index
      %80 = vector.load %arg10[%c0_41, %c0_42] : memref<16x1xf32, #tpu.memory_space<vmem>>, vector<16x1xf32>
      %81 = vector.broadcast %80 : vector<16x1xf32> to vector<16x16xf32>
      %82 = arith.addf %79, %81 : vector<16x16xf32>
      %c0_43 = arith.constant 0 : index
      %c0_44 = arith.constant 0 : index
      %83 = vector.load %arg18[%c0_43, %c0_44] : memref<16x1xf32, #tpu.memory_space<vmem>>, vector<16x1xf32>
      %cst_45 = arith.constant 3.125000e-02 : f32
      %84 = vector.broadcast %cst_45 : f32 to vector<16x1xf32>
      %85 = arith.mulf %83, %84 : vector<16x1xf32>
      %c0_46 = arith.constant 0 : index
      %c0_47 = arith.constant 0 : index
      %86 = vector.load %arg19[%c0_46, %c0_47] : memref<16x1xf32, #tpu.memory_space<vmem>>, vector<16x1xf32>
      %cst_48 = arith.constant 3.125000e-02 : f32
      %87 = vector.broadcast %cst_48 : f32 to vector<16x1xf32>
      %88 = arith.mulf %86, %87 : vector<16x1xf32>
      %89 = arith.mulf %85, %85 : vector<16x1xf32>
      %90 = arith.subf %88, %89 : vector<16x1xf32>
      %cst_49 = arith.constant 9.99999974E-6 : f32
      %91 = vector.broadcast %cst_49 : f32 to vector<16x1xf32>
      %92 = arith.addf %90, %91 : vector<16x1xf32>
      %93 = math.rsqrt %92 : vector<16x1xf32>
      %c0_50 = arith.constant 0 : index
      %c0_51 = arith.constant 0 : index
      %94 = vector.load %arg11[%c0_50, %c0_51] : memref<16x1xf32, #tpu.memory_space<vmem>>, vector<16x1xf32>
      %95 = arith.mulf %93, %94 : vector<16x1xf32>
      %96 = vector.broadcast %85 : vector<16x1xf32> to vector<16x16xf32>
      %97 = arith.subf %82, %96 : vector<16x16xf32>
      %98 = vector.broadcast %95 : vector<16x1xf32> to vector<16x16xf32>
      %99 = arith.mulf %97, %98 : vector<16x16xf32>
      %c0_52 = arith.constant 0 : index
      %c0_53 = arith.constant 0 : index
      %100 = vector.load %arg12[%c0_52, %c0_53] : memref<16x1xf32, #tpu.memory_space<vmem>>, vector<16x1xf32>
      %101 = vector.broadcast %100 : vector<16x1xf32> to vector<16x16xf32>
      %102 = arith.addf %99, %101 : vector<16x16xf32>
      %cst_54 = arith.constant 0.000000e+00 : f32
      %103 = vector.broadcast %cst_54 : f32 to vector<16x16xf32>
      %104 = arith.maximumf %102, %103 : vector<16x16xf32>
      %c0_55 = arith.constant 0 : index
      %c0_56 = arith.constant 0 : index
      %105 = vector.load %arg13[%c0_55, %c0_56] : memref<8x16xf32, #tpu.memory_space<vmem>>, vector<8x16xf32>
      %cst_57 = arith.constant dense<0.000000e+00> : vector<8x16xf32>
      %106 = tpu.matmul %105, %104, %cst_57 {dimension_numbers = #tpu.dot_dimension_numbers<[1], [0], [0], [1], [0, 0, 1, 1], [], []>} : vector<8x16xf32>, vector<16x16xf32>, vector<8x16xf32> -> vector<8x16xf32>
      %c0_58 = arith.constant 0 : index
      %c0_59 = arith.constant 0 : index
      %107 = vector.load %arg14[%c0_58, %c0_59] : memref<8x1xf32, #tpu.memory_space<vmem>>, vector<8x1xf32>
      %108 = vector.broadcast %107 : vector<8x1xf32> to vector<8x16xf32>
      %109 = arith.addf %106, %108 : vector<8x16xf32>
      %cst_60 = arith.constant dense<0xFF800000> : vector<16xf32>
      %110 = vector.multi_reduction <maximumf>, %109, %cst_60 [0] : vector<8x16xf32> to vector<16xf32>
      %111 = vector.shape_cast %110 : vector<16xf32> to vector<1x16xf32>
      %112 = vector.broadcast %111 : vector<1x16xf32> to vector<8x16xf32>
      %113 = arith.subf %109, %112 : vector<8x16xf32>
      %114 = math.exp %113 : vector<8x16xf32>
      %cst_61 = arith.constant dense<0.000000e+00> : vector<16xf32>
      %115 = vector.multi_reduction <add>, %114, %cst_61 [0] : vector<8x16xf32> to vector<16xf32>
      %116 = vector.shape_cast %115 : vector<16xf32> to vector<1x16xf32>
      %117 = vector.broadcast %111 : vector<1x16xf32> to vector<8x16xf32>
      %118 = arith.subf %109, %117 : vector<8x16xf32>
      %119 = math.log %116 : vector<1x16xf32>
      %120 = vector.broadcast %119 : vector<1x16xf32> to vector<8x16xf32>
      %121 = arith.subf %118, %120 : vector<8x16xf32>
      %c0_62 = arith.constant 0 : index
      %c0_63 = arith.constant 0 : index
      %c0_64 = arith.constant 0 : index
      %122 = vector.load %arg4[%c0_62, %c0_63, %c0_64] : memref<1x3x16xf32, #tpu.memory_space<vmem>>, vector<1x3x16xf32>
      %123 = vector.shape_cast %122 : vector<1x3x16xf32> to vector<3x16xf32>
      %124 = vector.extract_strided_slice %47 {offsets = [0, 0], sizes = [8, 1], strides = [1, 1]} : vector<8x3xf32> to vector<8x1xf32>
      %125 = vector.extract_strided_slice %123 {offsets = [0, 0], sizes = [1, 16], strides = [1, 1]} : vector<3x16xf32> to vector<1x16xf32>
      %126 = vector.broadcast %124 : vector<8x1xf32> to vector<8x16xf32>
      %127 = vector.broadcast %125 : vector<1x16xf32> to vector<8x16xf32>
      %128 = arith.mulf %126, %127 : vector<8x16xf32>
      %129 = vector.extract_strided_slice %47 {offsets = [0, 1], sizes = [8, 1], strides = [1, 1]} : vector<8x3xf32> to vector<8x1xf32>
      %130 = vector.extract_strided_slice %123 {offsets = [1, 0], sizes = [1, 16], strides = [1, 1]} : vector<3x16xf32> to vector<1x16xf32>
      %131 = vector.broadcast %129 : vector<8x1xf32> to vector<8x16xf32>
      %132 = vector.broadcast %130 : vector<1x16xf32> to vector<8x16xf32>
      %133 = arith.mulf %131, %132 : vector<8x16xf32>
      %134 = arith.addf %128, %133 : vector<8x16xf32>
      %135 = vector.extract_strided_slice %47 {offsets = [0, 2], sizes = [8, 1], strides = [1, 1]} : vector<8x3xf32> to vector<8x1xf32>
      %136 = vector.extract_strided_slice %123 {offsets = [2, 0], sizes = [1, 16], strides = [1, 1]} : vector<3x16xf32> to vector<1x16xf32>
      %137 = vector.broadcast %135 : vector<8x1xf32> to vector<8x16xf32>
      %138 = vector.broadcast %136 : vector<1x16xf32> to vector<8x16xf32>
      %139 = arith.mulf %137, %138 : vector<8x16xf32>
      %140 = arith.addf %134, %139 : vector<8x16xf32>
      %141 = arith.mulf %47, %47 : vector<8x3xf32>
      %cst_65 = arith.constant dense<0.000000e+00> : vector<8xf32>
      %142 = vector.multi_reduction <add>, %141, %cst_65 [1] : vector<8x3xf32> to vector<8xf32>
      %143 = vector.shape_cast %142 : vector<8xf32> to vector<8x1xf32>
      %cst_66 = arith.constant 2.000000e+00 : f32
      %144 = vector.broadcast %cst_66 : f32 to vector<8x16xf32>
      %145 = arith.mulf %144, %140 : vector<8x16xf32>
      %146 = vector.broadcast %143 : vector<8x1xf32> to vector<8x16xf32>
      %147 = arith.subf %145, %146 : vector<8x16xf32>
      %cst_67 = arith.constant 1.000000e+02 : f32
      %148 = vector.broadcast %cst_67 : f32 to vector<8x16xf32>
      %149 = arith.mulf %147, %148 : vector<8x16xf32>
      %cst_68 = arith.constant dense<0xFF800000> : vector<16xf32>
      %150 = vector.multi_reduction <maximumf>, %149, %cst_68 [0] : vector<8x16xf32> to vector<16xf32>
      %151 = vector.shape_cast %150 : vector<16xf32> to vector<1x16xf32>
      %152 = vector.broadcast %151 : vector<1x16xf32> to vector<8x16xf32>
      %153 = arith.subf %149, %152 : vector<8x16xf32>
      %154 = math.exp %153 : vector<8x16xf32>
      %155 = arith.mulf %154, %121 : vector<8x16xf32>
      %cst_69 = arith.constant dense<0.000000e+00> : vector<16xf32>
      %156 = vector.multi_reduction <add>, %155, %cst_69 [0] : vector<8x16xf32> to vector<16xf32>
      %157 = vector.shape_cast %156 : vector<16xf32> to vector<1x16xf32>
      %cst_70 = arith.constant dense<0.000000e+00> : vector<16xf32>
      %158 = vector.multi_reduction <add>, %154, %cst_70 [0] : vector<8x16xf32> to vector<16xf32>
      %159 = vector.shape_cast %158 : vector<16xf32> to vector<1x16xf32>
      %160 = tpu.reciprocal %159 : vector<1x16xf32> -> vector<1x16xf32>
      %161 = arith.mulf %157, %160 : vector<1x16xf32>
      %162 = vector.shape_cast %161 : vector<1x16xf32> to vector<1x1x16xf32>
      %cst_71 = arith.constant dense<0.000000e+00> : vector<1xf32>
      %163 = vector.multi_reduction <add>, %162, %cst_71 [1, 2] : vector<1x1x16xf32> to vector<1xf32>
      %164 = vector.shape_cast %163 : vector<1xf32> to vector<1x1x1xf32>
      %165 = vector.extract %164[0, 0, 0] : f32 from vector<1x1x1xf32>
      %cst_72 = arith.constant 0.000000e+00 : f32
      %166 = arith.subf %cst_72, %165 : f32
      %cst_73 = arith.constant 3.125000e-02 : f32
      %167 = arith.mulf %166, %cst_73 : f32
      %168 = arith.mulf %1, %1 : vector<32x16xf32>
      %cst_74 = arith.constant dense<0.000000e+00> : vector<16xf32>
      %169 = vector.multi_reduction <add>, %168, %cst_74 [0] : vector<32x16xf32> to vector<16xf32>
      %170 = vector.shape_cast %169 : vector<16xf32> to vector<1x16xf32>
      %cst_75 = arith.constant 1.000000e-24 : f32
      %171 = vector.broadcast %cst_75 : f32 to vector<1x16xf32>
      %172 = arith.maximumf %170, %171 : vector<1x16xf32>
      %173 = math.rsqrt %172 : vector<1x16xf32>
      %cst_76 = arith.constant dense<0.000000e+00> : vector<8x16xf32>
      %174 = tpu.matmul %46, %1, %cst_76 {dimension_numbers = #tpu.dot_dimension_numbers<[1], [0], [0], [1], [0, 0, 1, 1], [], []>} : vector<8x32xf32>, vector<32x16xf32>, vector<8x16xf32> -> vector<8x16xf32>
      %175 = vector.broadcast %173 : vector<1x16xf32> to vector<8x16xf32>
      %176 = arith.mulf %174, %175 : vector<8x16xf32>
      %177 = arith.mulf %46, %46 : vector<8x32xf32>
      %cst_77 = arith.constant dense<0.000000e+00> : vector<8xf32>
      %178 = vector.multi_reduction <add>, %177, %cst_77 [1] : vector<8x32xf32> to vector<8xf32>
      %179 = vector.shape_cast %178 : vector<8xf32> to vector<8x1xf32>
      %cst_78 = arith.constant 2.000000e+00 : f32
      %180 = vector.broadcast %cst_78 : f32 to vector<8x16xf32>
      %181 = arith.mulf %180, %176 : vector<8x16xf32>
      %182 = vector.broadcast %179 : vector<8x1xf32> to vector<8x16xf32>
      %183 = arith.subf %181, %182 : vector<8x16xf32>
      %cst_79 = arith.constant 1.000000e+02 : f32
      %184 = vector.broadcast %cst_79 : f32 to vector<8x16xf32>
      %185 = arith.mulf %183, %184 : vector<8x16xf32>
      %cst_80 = arith.constant dense<0xFF800000> : vector<16xf32>
      %186 = vector.multi_reduction <maximumf>, %185, %cst_80 [0] : vector<8x16xf32> to vector<16xf32>
      %187 = vector.shape_cast %186 : vector<16xf32> to vector<1x16xf32>
      %188 = vector.broadcast %187 : vector<1x16xf32> to vector<8x16xf32>
      %189 = arith.subf %185, %188 : vector<8x16xf32>
      %190 = math.exp %189 : vector<8x16xf32>
      %191 = arith.mulf %190, %121 : vector<8x16xf32>
      %cst_81 = arith.constant dense<0.000000e+00> : vector<16xf32>
      %192 = vector.multi_reduction <add>, %191, %cst_81 [0] : vector<8x16xf32> to vector<16xf32>
      %193 = vector.shape_cast %192 : vector<16xf32> to vector<1x16xf32>
      %cst_82 = arith.constant dense<0.000000e+00> : vector<16xf32>
      %194 = vector.multi_reduction <add>, %190, %cst_82 [0] : vector<8x16xf32> to vector<16xf32>
      %195 = vector.shape_cast %194 : vector<16xf32> to vector<1x16xf32>
      %196 = tpu.reciprocal %195 : vector<1x16xf32> -> vector<1x16xf32>
      %197 = arith.mulf %193, %196 : vector<1x16xf32>
      %198 = vector.shape_cast %197 : vector<1x16xf32> to vector<1x1x16xf32>
      %cst_83 = arith.constant dense<0.000000e+00> : vector<1xf32>
      %199 = vector.multi_reduction <add>, %198, %cst_83 [1, 2] : vector<1x1x16xf32> to vector<1xf32>
      %200 = vector.shape_cast %199 : vector<1xf32> to vector<1x1x1xf32>
      %201 = vector.extract %200[0, 0, 0] : f32 from vector<1x1x1xf32>
      %cst_84 = arith.constant 0.000000e+00 : f32
      %202 = arith.subf %cst_84, %201 : f32
      %cst_85 = arith.constant 3.125000e-02 : f32
      %203 = arith.mulf %202, %cst_85 : f32
      %c0_86 = arith.constant 0 : index
      %c0_87 = arith.constant 0 : index
      %204 = vector.load %arg23[%c0_86, %c0_87] : memref<1x1xf32, #tpu.memory_space<vmem>>, vector<1x1xf32>
      %205 = arith.addf %167, %203 : f32
      %206 = vector.broadcast %205 : f32 to vector<1x1xf32>
      %207 = arith.addf %204, %206 : vector<1x1xf32>
      %c0_88 = arith.constant 0 : index
      %c0_89 = arith.constant 0 : index
      %208 = vector.load %arg23[%c0_88, %c0_89] : memref<1x1xf32, #tpu.memory_space<vmem>>, vector<1x1xf32>
      tpu.vector_store %arg23[%c0_88, %c0_89], %207 {strides = array<i32>} : memref<1x1xf32, #tpu.memory_space<vmem>>, vector<1x1xf32>,
      %c1_i32_90 = arith.constant 1 : i32
      %209 = arith.cmpi eq, %arg1, %c1_i32_90 : i32
      %c0_i32_91 = arith.constant 0 : i32
      %210 = arith.cmpi eq, %arg2, %c0_i32_91 : i32
      %211 = arith.andi %209, %210 : i1
      %212 = arith.extui %211 : i1 to i32
      %c0_i32_92 = arith.constant 0 : i32
      %213 = arith.cmpi ne, %212, %c0_i32_92 : i32
      scf.if %213 {
        %c0_93 = arith.constant 0 : index
        %c0_94 = arith.constant 0 : index
        %214 = vector.load %arg23[%c0_93, %c0_94] : memref<1x1xf32, #tpu.memory_space<vmem>>, vector<1x1xf32>
        %c0_95 = arith.constant 0 : index
        %c0_96 = arith.constant 0 : index
        %215 = vector.load %arg15[%c0_95, %c0_96] : memref<1x1xf32, #tpu.memory_space<vmem>>, vector<1x1xf32>
        tpu.vector_store %arg15[%c0_95, %c0_96], %214 {strides = array<i32>} : memref<1x1xf32, #tpu.memory_space<vmem>>, vector<1x1xf32>,
      } else {
      }
    } else {
    }
    return
  }
  func.func @transform_0(%arg0: i32, %arg1: i32, %arg2: i32) -> (i32, i32, i32) {
    %c0_i32 = arith.constant 0 : i32
    %c0_i32_0 = arith.constant 0 : i32
    return %arg1, %c0_i32, %arg2 : i32, i32, i32
  }
  func.func @transform_1(%arg0: i32, %arg1: i32, %arg2: i32) -> (i32, i32, i32) {
    %c0_i32 = arith.constant 0 : i32
    %c0_i32_0 = arith.constant 0 : i32
    return %arg1, %c0_i32, %arg2 : i32, i32, i32
  }
  func.func @transform_2(%arg0: i32, %arg1: i32, %arg2: i32) -> (i32, i32) {
    %c0_i32 = arith.constant 0 : i32
    %c0_i32_0 = arith.constant 0 : i32
    %c0_i32_1 = arith.constant 0 : i32
    return %c0_i32, %c0_i32_0 : i32, i32
  }
  func.func @transform_3(%arg0: i32, %arg1: i32, %arg2: i32) -> (i32, i32) {
    %c0_i32 = arith.constant 0 : i32
    %c0_i32_0 = arith.constant 0 : i32
    %c0_i32_1 = arith.constant 0 : i32
    return %c0_i32, %c0_i32_0 : i32, i32
  }
  func.func @transform_4(%arg0: i32, %arg1: i32, %arg2: i32) -> (i32, i32) {
    %c0_i32 = arith.constant 0 : i32
    %c0_i32_0 = arith.constant 0 : i32
    %c0_i32_1 = arith.constant 0 : i32
    return %c0_i32, %c0_i32_0 : i32, i32
  }
  func.func @transform_5(%arg0: i32, %arg1: i32, %arg2: i32) -> (i32, i32) {
    %c0_i32 = arith.constant 0 : i32
    %c0_i32_0 = arith.constant 0 : i32
    %c0_i32_1 = arith.constant 0 : i32
    return %c0_i32, %c0_i32_0 : i32, i32
  }
  func.func @transform_6(%arg0: i32, %arg1: i32, %arg2: i32) -> (i32, i32) {
    %c0_i32 = arith.constant 0 : i32
    %c0_i32_0 = arith.constant 0 : i32
    %c0_i32_1 = arith.constant 0 : i32
    return %c0_i32, %c0_i32_0 : i32, i32
  }
  func.func @transform_7(%arg0: i32, %arg1: i32, %arg2: i32) -> (i32, i32) {
    %c0_i32 = arith.constant 0 : i32
    %c0_i32_0 = arith.constant 0 : i32
    %c0_i32_1 = arith.constant 0 : i32
    return %c0_i32, %c0_i32_0 : i32, i32
  }
  func.func @transform_8(%arg0: i32, %arg1: i32, %arg2: i32) -> (i32, i32) {
    %c0_i32 = arith.constant 0 : i32
    %c0_i32_0 = arith.constant 0 : i32
    %c0_i32_1 = arith.constant 0 : i32
    return %c0_i32, %c0_i32_0 : i32, i32
  }
  func.func @transform_9(%arg0: i32, %arg1: i32, %arg2: i32) -> (i32, i32) {
    %c0_i32 = arith.constant 0 : i32
    %c0_i32_0 = arith.constant 0 : i32
    %c0_i32_1 = arith.constant 0 : i32
    return %c0_i32, %c0_i32_0 : i32, i32
  }
  func.func @transform_10(%arg0: i32, %arg1: i32, %arg2: i32) -> (i32, i32) {
    %c0_i32 = arith.constant 0 : i32
    %c0_i32_0 = arith.constant 0 : i32
    %c0_i32_1 = arith.constant 0 : i32
    return %c0_i32, %c0_i32_0 : i32, i32
  }
  func.func @transform_11(%arg0: i32, %arg1: i32, %arg2: i32) -> (i32, i32) {
    %c0_i32 = arith.constant 0 : i32
    %c0_i32_0 = arith.constant 0 : i32
    %c0_i32_1 = arith.constant 0 : i32
    return %c0_i32, %c0_i32_0 : i32, i32
  }
  func.func @transform_12(%arg0: i32, %arg1: i32, %arg2: i32) -> (i32, i32) {
    %c0_i32 = arith.constant 0 : i32
    %c0_i32_0 = arith.constant 0 : i32
    %c0_i32_1 = arith.constant 0 : i32
    return %c0_i32, %c0_i32_0 : i32, i32
  }
}

</mosaic_0001>

<bundles_post_ra>
// kernel: tpu_custom_call.1
= control target key start
LH: loop header
LB: loop body
LE: loop exit
PB: predicated region body
PF: predicated region fallthrough
CT: control target
= control target key end

     0   :  { %17 = vsyncpa [#allocation11], 0  ;;  %s3110_s21 = smov 0   ;;  %s3112_s22 = smov 0   ;;  %s3552_s0 = inlined_call_operand.vmem [shape: f32[2,32,16], index: 0, kind: input, shape index: {}]   ;;  %s3553_s1 = inlined_call_operand.vmem [shape: f32[2,3,16], index: 1, kind: input, shape index: {}]   ;;  %s3554_s2 = inlined_call_operand.vmem [shape: f32[16,32], index: 2, kind: input, shape index: {}]   ;;  %s3555_s3 = inlined_call_operand.vmem [shape: f32[16,1], index: 3, kind: input, shape index: {}]   ;;  %s3556_s4 = inlined_call_operand.vmem [shape: f32[16,1], index: 4, kind: input, shape index: {}]   ;;  %s3557_s5 = inlined_call_operand.vmem [shape: f32[16,1], index: 5, kind: input, shape index: {}]   ;;  %s3558_s6 = inlined_call_operand.vmem [shape: f32[16,16], index: 6, kind: input, shape index: {}]   ;;  %s3559_s7 = inlined_call_operand.vmem [shape: f32[16,1], index: 7, kind: input, shape index: {}]   ;;  %s3560_s8 = inlined_call_operand.vmem [shape: f32[16,1], index: 8, kind: input, shape index: {}]   ;;  %s3561_s9 = inlined_call_operand.vmem [shape: f32[16,1], index: 9, kind: input, shape index: {}]   ;;  %s3562_s10 = inlined_call_operand.vmem [shape: f32[8,16], index: 10, kind: input, shape index: {}]   ;;  %s3563_s11 = inlined_call_operand.vmem [shape: f32[8,1], index: 11, kind: input, shape index: {}]   ;;  %s3564_s12 = inlined_call_operand.hbm [shape: f32[1,1], index: 12, kind: output, shape index: {}]  }
   0x1   :  { %s3114_s23 = smov 0   ;;  %s3116_s24 = smov 0  }
   0x2   :  { %s3118_s25 = smov 0  }
   0x3 LB: > { %s38_s27 = sadd.s32 1, %s3023_s23  ;;  %s42_s28 = sadd.s32 1, %s3027_s24  ;;  %s3031_s25 = sphi %s3118_s25, %s23_s25   ;;  %s3027_s24 = sphi %s3116_s24, %s3570_s24   ;;  %s3023_s23 = sphi %s3114_s23, %s3569_s23   ;;  %s3019_s22 = sphi %s3112_s22, %s3568_s22   ;;  %s3015_s21 = sphi %s3110_s21, %s3567_s21  }
   0x4   : > { %p40_p0 = scmp.ge.s32.totalorder %s38_s27, 2  ;;  %p2616_p1 = scmp.ge.s32.totalorder %s3031_s25, 1 }
   0x5   : > { %p396_p2 = scmp.lt.s32.totalorder %s3031_s25, 9 }
   0x6   : > { %s3572_s27 = smov (%p40_p0, %s38_s27), 0  ;;  %s3574_s28 = smov (!%p40_p0, %s42_s28), %s3027_s24 }
   0x7   : > { %p397_p3 = pnand %p2616_p1, %p396_p2  ;;  %p44_p4 = scmp.ge.s32.totalorder %s3574_s28, 4 }
   0x8   : > { %p443_p5 = scmp.lt.s32.totalorder (!%p397_p3), %s3015_s21, 1  ;;  %p462_p6 = scmp.eq.s32.totalorder (!%p397_p3), %s3019_s22, 0 }
   0x9   : > { %s3576_s28 = smov (%p44_p4, %s3574_s28), 0  ;;  %400 = sbr.rel (%p397_p3) target bundleno = 3064 (0xbf8), region = 68 }
   0xa   : > { %p463_p7 = scmp.eq.s32.totalorder (!%p397_p3), %s3015_s21, 0 }
   0xc   : > { %p464_p8 = pnand (!%p397_p3), %p463_p7, %p462_p6 }
   0xe   : > { %s444_s29 = scalar_select %p443_p5, %s3015_s21, 1 }
   0xf   : > { %470 = sbr.rel (%p464_p8) target bundleno = 32 (0x20), region = 72 }
  0x10   : > { %s2660_s30 = sshll.u32 %s444_s29, 5  ;;  %s2619_s13 = sshll.u32 %s444_s29, 2 }
  0x11   : > { %s450_s16 = scalar_lea.vmem %s3552_s0, %s2660_s30  ;;  %s3155_s19 = scalar_lea.vmem %s3553_s1, %s2619_s13 }
  0x12   : > { %v3157_v0 = vld [vmem:[%s450_s16] sm:$0xff]  ;;  %v3159_v1 = vld [vmem:[%s450_s16 + $0x8] sm:$0xff]  ;;  %v3161_v2 = vld [vmem:[%s450_s16 + $0x10] sm:$0xff] }
  0x13   : > { %v3163_v3 = vld [vmem:[%s450_s16 + $0x18] sm:$0xff] }
  0x14   : > { %vm471_vm0 = vcmask 7168   ;;  %vm480_vm1 = vcmask 57344   ;;  %vm483_vm2 = vcmask 59392   ;;  %v3033_v4 = vmov 0.0  }
  0x15   : > { %472 = vst.msk [vmem:[#allocation2] sm:$0xff] %vm471_vm0, %v3033_v4  ;;  %473 = vst.msk [vmem:[#allocation2 + $0x8] sm:$0xff] %vm471_vm0, %v3033_v4  ;;  %vm486_vm3 = vcmask 64512   ;;  %vm495_vm4 = vcmask 0  }
  0x16   : > { %474 = vst.msk [vmem:[#allocation3] sm:$0xff] %vm471_vm0, %v3033_v4  ;;  %475 = vst.msk [vmem:[#allocation3 + $0x8] sm:$0xff] %vm471_vm0, %v3033_v4 }
  0x17   : > { %476 = vst.msk [vmem:[#allocation4] sm:$0xff] %vm471_vm0, %v3033_v4  ;;  %477 = vst.msk [vmem:[#allocation4 + $0x8] sm:$0xff] %vm471_vm0, %v3033_v4 }
  0x18   : > { %478 = vst.msk [vmem:[#allocation5] sm:$0xff] %vm471_vm0, %v3033_v4  ;;  %479 = vst.msk [vmem:[#allocation5 + $0x8] sm:$0xff] %vm471_vm0, %v3033_v4 }
  0x19   : > { %481 = vst.msk [vmem:[#allocation6] sm:$0x1] %vm480_vm1, %v3033_v4  ;;  %482 = vst.msk [vmem:[#allocation6 + $0x1] sm:$0x1] %vm480_vm1, %v3033_v4 }
  0x1a   : > { %484 = vst.msk [vmem:[#allocation7] sm:$0x7] %vm483_vm2, %v3033_v4  ;;  %485 = vst.msk [vmem:[#allocation7 + $0x4] sm:$0x7] %vm483_vm2, %v3033_v4 }
  0x1b   : > { %487 = vst.msk [vmem:[#allocation8] sm:$0xff] %vm486_vm3, %v3033_v4  ;;  %488 = vst.msk [vmem:[#allocation8 + $0x8] sm:$0xff] %vm486_vm3, %v3033_v4 }
  0x1c   : > { %489 = vst.msk [vmem:[#allocation8 + $0x10] sm:$0xff] %vm486_vm3, %v3033_v4  ;;  %490 = vst.msk [vmem:[#allocation8 + $0x18] sm:$0xff] %vm486_vm3, %v3033_v4 }
  0x1d   : > { %491 = vst.msk [vmem:[#allocation8 + $0x20] sm:$0xff] %vm486_vm3, %v3033_v4  ;;  %492 = vst.msk [vmem:[#allocation8 + $0x28] sm:$0xff] %vm486_vm3, %v3033_v4 }
  0x1e   : > { %493 = vst.msk [vmem:[#allocation8 + $0x30] sm:$0xff] %vm486_vm3, %v3033_v4  ;;  %494 = vst.msk [vmem:[#allocation8 + $0x38] sm:$0xff] %vm486_vm3, %v3033_v4 }
  0x1f   : > { %496 = vst.msk [vmem:[#allocation9] sm:$0x1] %vm495_vm4, %v3033_v4 }
  0x20 PF: > { %p2621_p9 = scmp.ne.s32.totalorder %s3019_s22, 0 }
  0x22   : > { %499 = sbr.rel (%p2621_p9) target bundleno = 392 (0x188), region = 76 }
  0x27   : > { %2725 = vmatprep.subr.mxu0 %v3163_v3  ;;  %v500_v5 = vld [vmem:[%s3554_s2] sm:$0xff]  ;;  %vm514_vm5 = vcmask 261120   ;;  %v3034_v7 = vmov 0   ;;  %v503_v8 = vld [vmem:[%s3555_s3 + $0x8] sm:$0xff]  ;;  %vm598_vm6 = vcmask 130048   ;;  %vm607_vm7 = vcmask 7168  }
  0x28   : > { %v502_v6 = vld [vmem:[%s3555_s3] sm:$0xff]  ;;  %2726 = vmatpush3.msra.mxu0 %v3163_v3  ;;  %2733 = vmatprep.mubr.msk.f32.mxu0 %vm514_vm5, %v500_v5  ;;  %v501_v9 = vld [vmem:[%s3554_s2 + $0x8] sm:$0xff]  ;;  %v610_v25 = vld [vmem:[#allocation3] sm:$0xff] }
  0x29   : > { %2727 = vmatprep.subr.mxu0 %v3161_v2  ;;  %2914 = vset.pattern.permute.xlu0 %v3034_v7  ;;  %v597_v22 = vld [vmem:[#allocation2 + $0x8] sm:$0xff]  ;;  %v596_v26 = vld [vmem:[#allocation2] sm:$0xff]  ;;  %v611_v31 = vld [vmem:[#allocation3 + $0x8] sm:$0xff] }
  0x2a   : > { %2728 = vmatpush3.msra.mxu0 %v3161_v2  ;;  %506 = vperm.xlu0 %2914, %v502_v6  }
  0x2b   : > { %2729 = vmatprep.subr.mxu0 %v3159_v1 }
  0x2c   : > { %2730 = vmatpush3.msra.mxu0 %v3159_v1 }
  0x2d   : > { %2731 = vmatprep.subr.mxu0 %v3157_v0 }
  0x2e   : > { %2732 = vmatpush3.msra.mxu0 %v3157_v0  ;;  %511 = vperm.xlu0 %2914, %v503_v8  }
  0x2f   : > { %2734 = vmatmul.mubr.msk.f32.vlgmr.msra.gmra.mxu0 %vm514_vm5, %v501_v9 }
  0xa5   : > { %v507_v10 = vpop.permute.xlu0 %506 }
  0xa9   : > { %v512_v11 = vpop.permute.xlu0 %511 }
  0xef   : > { %v2735_v12 = vpop.f32.mrf.mxu0 }
  0xf0   : > { %v593_v13 = vadd.f32 %v2735_v12, %v512_v11 }
  0xf1   : > { %v587_v14 = vpop.f32.mrf.mxu0 }
  0xf2   : > { %v588_v15 = vadd.f32 %v587_v14, %v507_v10  ;;  %v602_v16 = vsel %vm598_vm6, %v593_v13, 0.0  ;;  %v613_v20 = vmul.f32 %v593_v13, %v593_v13 }
  0xf3   : > { %603 = vadd.xlane.f32.xlu1 %v602_v16 }
  0xf4   : > { %v612_v17 = vmul.f32 %v588_v15, %v588_v15  ;;  %v599_v19 = vsel %vm598_vm6, %v588_v15, 0.0  ;;  %v617_v21 = vsel %vm598_vm6, %v613_v20, 0.0 }
  0xf6   : > { %v614_v18 = vsel %vm598_vm6, %v612_v17, 0.0 }
  0xf7   : > { %615 = vadd.xlane.f32.xlu0 %v614_v18  ;;  %600 = vadd.xlane.f32.xlu1 %v599_v19 }
  0xfb   : > { %618 = vadd.xlane.f32.xlu1 %v617_v21 }
 0x17c   : > { %v604_v23 = vpop.xlane.xlu1 %603 }
 0x17d   : > { %v606_v24 = vadd.f32 %v604_v23, %v597_v22 }
 0x17f   : > { %609 = vst.msk [vmem:[#allocation2 + $0x8] sm:$0xff] %vm607_vm7, %v606_v24 }
 0x180   : > { %v616_v27 = vpop.xlane.xlu0 %615  ;;  %v601_v28 = vpop.xlane.xlu1 %600 }
 0x181   : > { %v620_v29 = vadd.f32 %v616_v27, %v610_v25  ;;  %v605_v30 = vadd.f32 %v601_v28, %v596_v26 }
 0x183   : > { %622 = vst.msk [vmem:[#allocation3] sm:$0xff] %vm607_vm7, %v620_v29  ;;  %608 = vst.msk [vmem:[#allocation2] sm:$0xff] %vm607_vm7, %v605_v30 }
 0x184   : > { %v619_v32 = vpop.xlane.xlu1 %618 }
 0x185   : > { %v621_v33 = vadd.f32 %v619_v32, %v611_v31 }
 0x187   : > { %623 = vst.msk [vmem:[#allocation3 + $0x8] sm:$0xff] %vm607_vm7, %v621_v33 }
 0x188 PF: > { %p2624_p10 = scmp.ne.s32.totalorder %s3019_s22, 1 }
 0x18a   : > { %627 = sbr.rel (%p2624_p10) target bundleno = 961 (0x3c1), region = 80 }
 0x18f   : > { %2736 = vmatprep.subr.mxu0 %v3163_v3  ;;  %v628_v34 = vld [vmem:[%s3554_s2] sm:$0xff]  ;;  %vm642_vm8 = vcmask 261120   ;;  %v631_v35 = vld [vmem:[%s3555_s3 + $0x8] sm:$0xff]  ;;  %v729_v37 = vld [vmem:[#allocation3 + $0x8] sm:$0xff]  ;;  %v3035_v38 = vmov 0   ;;  %vm798_vm9 = vcmask 130048  }
 0x190   : > { %2737 = vmatpush3.msra.mxu0 %v3163_v3  ;;  %2744 = vmatprep.mubr.msk.f32.mxu0 %vm642_vm8, %v628_v34  ;;  %v725_v36 = vld [vmem:[#allocation2 + $0x8] sm:$0xff]  ;;  %v731_v40 = vmul.f32 0.03125, %v729_v37  ;;  %v724_v41 = vld [vmem:[#allocation2] sm:$0xff]  ;;  %v728_v42 = vld [vmem:[#allocation3] sm:$0xff]  ;;  %vm890_vm10 = vcmask 7168  }
 0x191   : > { %2738 = vmatprep.subr.mxu0 %v3161_v2  ;;  %2915 = vset.pattern.permute.xlu0 %v3035_v38  ;;  %v727_v39 = vmul.f32 0.03125, %v725_v36  ;;  %v726_v43 = vmul.f32 0.03125, %v724_v41  ;;  %v730_v44 = vmul.f32 0.03125, %v728_v42  ;;  %v630_v46 = vld [vmem:[%s3555_s3] sm:$0xff]  ;;  %v629_v47 = vld [vmem:[%s3554_s2 + $0x8] sm:$0xff] }
 0x192   : > { %2739 = vmatpush3.msra.mxu0 %v3161_v2  ;;  %639 = vperm.xlu0 %2915, %v631_v35   ;;  %v741_v53 = vld [vmem:[%s3556_s4 + $0x8] sm:$0xff]  ;;  %v740_v54 = vld [vmem:[%s3556_s4] sm:$0xff] }
 0x193   : > { %2740 = vmatprep.subr.mxu0 %v3159_v1  ;;  %2916 = vset.pattern.permute.xlu1 %v3035_v38  ;;  %v733_v45 = vmul.f32 %v727_v39, %v727_v39  ;;  %v732_v48 = vmul.f32 %v726_v43, %v726_v43  ;;  %v769_v59 = vld [vmem:[%s3557_s5 + $0x8] sm:$0xff]  ;;  %v768_v60 = vld [vmem:[%s3557_s5] sm:$0xff] }
 0x194   : > { %2741 = vmatpush3.msra.mxu0 %v3159_v1  ;;  %751 = vperm.xlu1 %2916, %v727_v39   ;;  %v786_v61 = vld [vmem:[%s3559_s7] sm:$0xff]  ;;  %v787_v62 = vld [vmem:[%s3559_s7 + $0x8] sm:$0xff] }
 0x195   : > { %2742 = vmatprep.subr.mxu0 %v3157_v0  ;;  %v735_v49 = vsub.f32 %v731_v40, %v733_v45  ;;  %v734_v50 = vsub.f32 %v730_v44, %v732_v48  ;;  %v784_v63 = vld [vmem:[%s3558_s6] sm:$0xff]  ;;  %v785_v24 = vld [vmem:[%s3558_s6 + $0x8] sm:$0xff] }
 0x196   : > { %2743 = vmatpush3.msra.mxu0 %v3157_v0  ;;  %634 = vperm.xlu0 %2915, %v630_v46   ;;  %v881_v37 = vld [vmem:[#allocation4 + $0x8] sm:$0xff]  ;;  %v880_v39 = vld [vmem:[#allocation4] sm:$0xff]  ;;  %v894_v46 = vld [vmem:[#allocation5 + $0x8] sm:$0xff] }
 0x197   : > { %2745 = vmatmul.mubr.msk.f32.vlgmr.msra.gmra.mxu0 %vm642_vm8, %v629_v47  ;;  %v737_v51 = vadd.f32 1e-05, %v735_v49  ;;  %v736_v52 = vadd.f32 1e-05, %v734_v50  ;;  %2751 = vmatprep.mubr.msk.f32.mxu1 %vm798_vm9, %v784_v63 }
 0x198   : > { %746 = vperm.xlu1 %2916, %v726_v43   ;;  %v893_v43 = vld [vmem:[#allocation5] sm:$0xff] }
 0x199   : > { %2917 = vrsqrt.f32 %v737_v51 }
 0x19a   : > { %2919 = vrsqrt.f32 %v736_v52 }
 0x1a6   : > { %v2918_v55 = vpop.eup %2917 }
 0x1a7   : > { %v2920_v56 = vpop.eup %2919  ;;  %v743_v57 = vmul.f32 %v2918_v55, %v741_v53 }
 0x1a8   : > { %v742_v58 = vmul.f32 %v2920_v56, %v740_v54 }
 0x1a9   : > { %763 = vperm.xlu0 %2915, %v743_v57  }
 0x1aa   : > { %758 = vperm.xlu1 %2916, %v742_v58  }
 0x1ad   : > { %777 = vperm.xlu0 %2915, %v769_v59  }
 0x1ae   : > { %772 = vperm.xlu1 %2916, %v768_v60  }
 0x1b1   : > { %790 = vperm.xlu0 %2915, %v786_v61  }
 0x1b2   : > { %795 = vperm.xlu1 %2916, %v787_v62  }
 0x20d   : > { %v640_v4 = vpop.permute.xlu0 %639 }
 0x20f   : > { %v752_v5 = vpop.permute.xlu1 %751 }
 0x211   : > { %v635_v6 = vpop.permute.xlu0 %634 }
 0x213   : > { %v747_v7 = vpop.permute.xlu1 %746 }
 0x224   : > { %v764_v8 = vpop.permute.xlu0 %763 }
 0x225   : > { %v759_v11 = vpop.permute.xlu1 %758 }
 0x228   : > { %v778_v17 = vpop.permute.xlu0 %777 }
 0x229   : > { %v773_v20 = vpop.permute.xlu1 %772 }
 0x22c   : > { %v791_v28 = vpop.permute.xlu0 %790 }
 0x22d   : > { %v796_v25 = vpop.permute.xlu1 %795 }
 0x257   : > { %v2746_v9 = vpop.f32.mrf.mxu0 }
 0x258   : > { %v721_v10 = vadd.f32 %v2746_v9, %v640_v4 }
 0x259   : > { %v715_v12 = vpop.f32.mrf.mxu0 }
 0x25a   : > { %v755_v13 = vsub.f32 %v721_v10, %v752_v5  ;;  %v716_v14 = vadd.f32 %v715_v12, %v635_v6 }
 0x25c   : > { %v754_v15 = vsub.f32 %v716_v14, %v747_v7  ;;  %v767_v16 = vmul.f32 %v764_v8, %v755_v13 }
 0x25e   : > { %v766_v18 = vmul.f32 %v759_v11, %v754_v15  ;;  %v781_v19 = vadd.f32 %v778_v17, %v767_v16 }
 0x260   : > { %v783_v21 = vmax.f32 %v781_v19, 0.0  ;;  %v780_v22 = vadd.f32 %v773_v20, %v766_v18 }
 0x262   : > { %2747 = vmatprep.subr.mxu1 %v783_v21  ;;  %v782_v23 = vmax.f32 %v780_v22, 0.0 }
 0x263   : > { %2748 = vmatpush3.msra.mxu1 %v783_v21 }
 0x264   : > { %2749 = vmatprep.subr.mxu1 %v782_v23 }
 0x265   : > { %2750 = vmatpush3.msra.mxu1 %v782_v23 }
 0x266   : > { %2752 = vmatmul.mubr.msk.f32.vlgmr.msra.gmra.mxu1 %vm798_vm9, %v785_v24 }
 0x326   : > { %v2753_v26 = vpop.f32.mrf.mxu1 }
 0x327   : > { %v877_v27 = vadd.f32 %v2753_v26, %v796_v25 }
 0x328   : > { %v871_v29 = vpop.f32.mrf.mxu1 }
 0x329   : > { %v872_v30 = vadd.f32 %v871_v29, %v791_v28  ;;  %v885_v31 = vsel %vm798_vm9, %v877_v27, 0.0  ;;  %v896_v35 = vmul.f32 %v877_v27, %v877_v27 }
 0x32a   : > { %886 = vadd.xlane.f32.xlu1 %v885_v31 }
 0x32b   : > { %v882_v32 = vsel %vm798_vm9, %v872_v30, 0.0  ;;  %v895_v33 = vmul.f32 %v872_v30, %v872_v30  ;;  %v900_v36 = vsel %vm798_vm9, %v896_v35, 0.0 }
 0x32c   : > { %883 = vadd.xlane.f32.xlu0 %v882_v32 }
 0x32d   : > { %v897_v34 = vsel %vm798_vm9, %v895_v33, 0.0 }
 0x330   : > { %898 = vadd.xlane.f32.xlu0 %v897_v34 }
 0x334   : > { %901 = vadd.xlane.f32.xlu0 %v900_v36 }
 0x3b3   : > { %v887_v38 = vpop.xlane.xlu1 %886 }
 0x3b4   : > { %v889_v40 = vadd.f32 %v887_v38, %v881_v37 }
 0x3b5   : > { %v884_v41 = vpop.xlane.xlu0 %883 }
 0x3b6   : > { %892 = vst.msk [vmem:[#allocation4 + $0x8] sm:$0xff] %vm890_vm10, %v889_v40  ;;  %v888_v42 = vadd.f32 %v884_v41, %v880_v39 }
 0x3b8   : > { %891 = vst.msk [vmem:[#allocation4] sm:$0xff] %vm890_vm10, %v888_v42 }
 0x3b9   : > { %v899_v44 = vpop.xlane.xlu0 %898 }
 0x3ba   : > { %v903_v45 = vadd.f32 %v899_v44, %v893_v43 }
 0x3bc   : > { %905 = vst.msk [vmem:[#allocation5] sm:$0xff] %vm890_vm10, %v903_v45 }
 0x3bd   : > { %v902_v47 = vpop.xlane.xlu0 %901 }
 0x3be   : > { %v904_v48 = vadd.f32 %v902_v47, %v894_v46 }
 0x3c0   : > { %906 = vst.msk [vmem:[#allocation5 + $0x8] sm:$0xff] %vm890_vm10, %v904_v48 }
 0x3c1 PF: > { %p2629_p11 = scmp.ne.s32.totalorder %s3019_s22, 2 }
 0x3c2   : > { %s1354_s20 = scalar_lea.vmem (!%p2629_p11), [#allocation6], %s3015_s21  ;;  %s2635_s29 = sshll.u32 (!%p2629_p11), %s3015_s21, 2 }
 0x3c3   : > { %910 = sbr.rel (%p2629_p11) target bundleno = 1979 (0x7bb), region = 84  ;;  %s2637_s26 = sshll.u32 (!%p2629_p11), %s3015_s21, 5 }
 0x3c4   : > { %s1371_s30 = scalar_lea.vmem (!%p2629_p11), [#allocation7], %s2635_s29  ;;  %s1450_s13 = scalar_lea.vmem (!%p2629_p11), [#allocation8], %s2637_s26 }
 0x3c8   : > { %2754 = vmatprep.subr.mxu0 %v3163_v3  ;;  %v911_v49 = vld [vmem:[%s3554_s2] sm:$0xff]  ;;  %vm925_vm11 = vcmask 261120   ;;  %v914_v50 = vld [vmem:[%s3555_s3 + $0x8] sm:$0xff]  ;;  %v1012_v52 = vld [vmem:[#allocation3 + $0x8] sm:$0xff]  ;;  %v3036_v53 = vmov 0   ;;  %vm1081_vm12 = vcmask 130048  }
 0x3c9   : > { %2755 = vmatpush3.msra.mxu0 %v3163_v3  ;;  %2762 = vmatprep.mubr.msk.f32.mxu0 %vm925_vm11, %v911_v49  ;;  %v1008_v51 = vld [vmem:[#allocation2 + $0x8] sm:$0xff]  ;;  %v1014_v55 = vmul.f32 0.03125, %v1012_v52  ;;  %v1007_v56 = vld [vmem:[#allocation2] sm:$0xff]  ;;  %v1011_v57 = vld [vmem:[#allocation3] sm:$0xff]  ;;  %vm3038_vm13 = vmmov 0   ;;  %vm1356_vm14 = vcmask 64512  }
 0x3ca   : > { %2756 = vmatprep.subr.mxu0 %v3161_v2  ;;  %2921 = vset.pattern.permute.xlu0 %v3036_v53  ;;  %v1010_v54 = vmul.f32 0.03125, %v1008_v51  ;;  %v1009_v58 = vmul.f32 0.03125, %v1007_v56  ;;  %v1013_v59 = vmul.f32 0.03125, %v1011_v57  ;;  %v913_v60 = vld [vmem:[%s3555_s3] sm:$0xff]  ;;  %v1164_v62 = vld [vmem:[#allocation4 + $0x8] sm:$0xff]  ;;  %v1168_v9 = vld [vmem:[#allocation5 + $0x8] sm:$0xff] }
 0x3cb   : > { %2757 = vmatpush3.msra.mxu0 %v3161_v2  ;;  %922 = vperm.xlu0 %2921, %v914_v50   ;;  %v912_v63 = vld [vmem:[%s3554_s2 + $0x8] sm:$0xff]  ;;  %v1163_v5 = vld [vmem:[#allocation4] sm:$0xff]  ;;  %v1166_v7 = vmul.f32 0.03125, %v1164_v62  ;;  %v1167_v12 = vld [vmem:[#allocation5] sm:$0xff]  ;;  %v1170_v14 = vmul.f32 0.03125, %v1168_v9  ;;  %vm1367_vm15 = vcmask 57344  }
 0x3cc   : > { %2758 = vmatprep.subr.mxu0 %v3159_v1  ;;  %2922 = vset.pattern.permute.xlu1 %v3036_v53  ;;  %v1016_v61 = vmul.f32 %v1010_v54, %v1010_v54  ;;  %v1015_v4 = vmul.f32 %v1009_v58, %v1009_v58  ;;  %v1165_v10 = vmul.f32 0.03125, %v1163_v5  ;;  %v1169_v16 = vmul.f32 0.03125, %v1167_v12  ;;  %v1024_v22 = vld [vmem:[%s3556_s4 + $0x8] sm:$0xff]  ;;  %v1023_v23 = vld [vmem:[%s3556_s4] sm:$0xff] }
 0x3cd   : > { %2759 = vmatpush3.msra.mxu0 %v3159_v1  ;;  %1034 = vperm.xlu1 %2922, %v1010_v54   ;;  %v1172_v15 = vmul.f32 %v1166_v7, %v1166_v7  ;;  %v1052_v28 = vld [vmem:[%s3557_s5 + $0x8] sm:$0xff]  ;;  %v1051_v29 = vld [vmem:[%s3557_s5] sm:$0xff]  ;;  %vm1447_vm0 = vcmask 59392  }
 0x3ce   : > { %2760 = vmatprep.subr.mxu0 %v3157_v0  ;;  %v1018_v6 = vsub.f32 %v1014_v55, %v1016_v61  ;;  %v1017_v8 = vsub.f32 %v1013_v59, %v1015_v4  ;;  %v1171_v17 = vmul.f32 %v1165_v10, %v1165_v10  ;;  %v1070_v30 = vld [vmem:[%s3559_s7 + $0x8] sm:$0xff]  ;;  %v1069_v31 = vld [vmem:[%s3559_s7] sm:$0xff] }
 0x3cf   : > { %2761 = vmatpush3.msra.mxu0 %v3157_v0  ;;  %917 = vperm.xlu0 %2921, %v913_v60   ;;  %v1174_v18 = vsub.f32 %v1170_v14, %v1172_v15  ;;  %v1180_v33 = vld [vmem:[%s3560_s8 + $0x8] sm:$0xff]  ;;  %v1179_v35 = vld [vmem:[%s3560_s8] sm:$0xff] }
 0x3d0   : > { %2763 = vmatmul.mubr.msk.f32.vlgmr.msra.gmra.mxu0 %vm925_vm11, %v912_v63  ;;  %v1020_v11 = vadd.f32 1e-05, %v1018_v6  ;;  %v1019_v13 = vadd.f32 1e-05, %v1017_v8  ;;  %v1173_v19 = vsub.f32 %v1169_v16, %v1171_v17  ;;  %v1208_v38 = vld [vmem:[%s3561_s9 + $0x8] sm:$0xff]  ;;  %v1207_v39 = vld [vmem:[%s3561_s9] sm:$0xff] }
 0x3d1   : > { %1029 = vperm.xlu1 %2922, %v1009_v58   ;;  %v1176_v20 = vadd.f32 1e-05, %v1174_v18  ;;  %v1224_v40 = vld [vmem:[%s3563_s11] sm:$0xff]  ;;  %v1068_v62 = vld [vmem:[%s3558_s6 + $0x8] sm:$0xff]  ;;  %v3037_v63 = vmov 0.0  }
 0x3d2   : > { %2923 = vrsqrt.f32 %v1020_v11  ;;  %v1175_v21 = vadd.f32 1e-05, %v1173_v19  ;;  %v1067_v41 = vld [vmem:[%s3558_s6] sm:$0xff]  ;;  %2779 = vmatprep.subr.mxu0 %v3037_v63  ;;  %2783 = vmatprep.mubr.msk.f32.mxu0 %vm3038_vm13, %v3037_v63 }
 0x3d3   : > { %2925 = vrsqrt.f32 %v1019_v13  ;;  %2769 = vmatprep.mubr.msk.f32.mxu1 %vm1081_vm12, %v1067_v41 }
 0x3d4   : > { %2927 = vrsqrt.f32 %v1176_v20 }
 0x3d5   : > { %2929 = vrsqrt.f32 %v1175_v21 }
 0x3df   : > { %v2924_v24 = vpop.eup %2923 }
 0x3e0   : > { %v2926_v25 = vpop.eup %2925  ;;  %v1026_v26 = vmul.f32 %v2924_v24, %v1024_v22  ;;  %v1223_v24 = vld [vmem:[%s3562_s10] sm:$0xff] }
 0x3e1   : > { %v1025_v27 = vmul.f32 %v2926_v25, %v1023_v23  ;;  %v2928_v32 = vpop.eup %2927 }
 0x3e2   : > { %1046 = vperm.xlu0 %2921, %v1026_v26   ;;  %v2930_v34 = vpop.eup %2929  ;;  %v1182_v36 = vmul.f32 %v2928_v32, %v1180_v33 }
 0x3e3   : > { %1041 = vperm.xlu1 %2922, %v1025_v27   ;;  %v1181_v37 = vmul.f32 %v2930_v34, %v1179_v35 }
 0x3e6   : > { %1060 = vperm.xlu0 %2921, %v1052_v28  }
 0x3e7   : > { %1055 = vperm.xlu1 %2922, %v1051_v29  }
 0x3ea   : > { %1078 = vperm.xlu0 %2921, %v1070_v30  }
 0x3eb   : > { %1073 = vperm.xlu1 %2922, %v1069_v31  }
 0x3ee   : > { %1190 = vperm.xlu0 %2921, %v1166_v7  }
 0x3ef   : > { %1185 = vperm.xlu1 %2922, %v1165_v10  }
 0x3f2   : > { %1202 = vperm.xlu0 %2921, %v1182_v36  }
 0x3f3   : > { %1197 = vperm.xlu1 %2922, %v1181_v37  }
 0x3f6   : > { %1216 = vperm.xlu0 %2921, %v1208_v38  }
 0x3f7   : > { %1211 = vperm.xlu1 %2922, %v1207_v39  }
 0x3fa   : > { %1227 = vperm.xlu0 %2921, %v1224_v40  }
 0x446   : > { %v923_v42 = vpop.permute.xlu0 %922 }
 0x448   : > { %v1035_v43 = vpop.permute.xlu1 %1034 }
 0x44a   : > { %v918_v44 = vpop.permute.xlu0 %917 }
 0x44c   : > { %v1030_v45 = vpop.permute.xlu1 %1029 }
 0x45d   : > { %v1047_v46 = vpop.permute.xlu0 %1046 }
 0x45e   : > { %v1042_v49 = vpop.permute.xlu1 %1041 }
 0x461   : > { %v1061_v55 = vpop.permute.xlu0 %1060 }
 0x462   : > { %v1056_v58 = vpop.permute.xlu1 %1055 }
 0x465   : > { %v1079_v4 = vpop.permute.xlu0 %1078 }
 0x466   : > { %v1074_v5 = vpop.permute.xlu1 %1073 }
 0x469   : > { %v1191_v6 = vpop.permute.xlu0 %1190 }
 0x46a   : > { %v1186_v7 = vpop.permute.xlu1 %1185 }
 0x46d   : > { %v1203_v8 = vpop.permute.xlu0 %1202 }
 0x46e   : > { %v1198_v11 = vpop.permute.xlu1 %1197 }
 0x471   : > { %v1217_v17 = vpop.permute.xlu0 %1216 }
 0x472   : > { %v1212_v20 = vpop.permute.xlu1 %1211 }
 0x475   : > { %v1228_v25 = vpop.permute.xlu0 %1227 }
 0x490   : > { %v2764_v47 = vpop.f32.mrf.mxu0 }
 0x491   : > { %v1004_v48 = vadd.f32 %v2764_v47, %v923_v42 }
 0x492   : > { %v998_v50 = vpop.f32.mrf.mxu0 }
 0x493   : > { %v1038_v51 = vsub.f32 %v1004_v48, %v1035_v43  ;;  %v999_v52 = vadd.f32 %v998_v50, %v918_v44 }
 0x495   : > { %v1037_v53 = vsub.f32 %v999_v52, %v1030_v45  ;;  %v1050_v54 = vmul.f32 %v1047_v46, %v1038_v51  ;;  %v1369_v52 = vld [vmem:[%s3155_s19] sm:$0x7] }
 0x497   : > { %v1049_v56 = vmul.f32 %v1042_v49, %v1037_v53  ;;  %v1064_v57 = vadd.f32 %v1061_v55, %v1050_v54 }
 0x499   : > { %v1066_v59 = vmax.f32 %v1064_v57, 0.0  ;;  %v1063_v60 = vadd.f32 %v1056_v58, %v1049_v56 }
 0x49b   : > { %2765 = vmatprep.subr.mxu1 %v1066_v59  ;;  %v1065_v61 = vmax.f32 %v1063_v60, 0.0 }
 0x49c   : > { %2766 = vmatpush3.msra.mxu1 %v1066_v59  ;;  %v1355_v59 = vld [vmem:[%s1354_s20] sm:$0x1] }
 0x49d   : > { %2767 = vmatprep.subr.mxu1 %v1065_v61 }
 0x49e   : > { %2768 = vmatpush3.msra.mxu1 %v1065_v61 }
 0x49f   : > { %2770 = vmatmul.mubr.msk.f32.vlgmr.msra.gmra.mxu1 %vm1081_vm12, %v1068_v62  ;;  %2772 = vmatprep.subr.mxu1 %v3037_v63  ;;  %v1372_v62 = vld [vmem:[%s1371_s30] sm:$0x7] }
 0x4a0   : > { %2776 = vmatprep.mubr.msk.f32.mxu1 %vm3038_vm13, %v3037_v63 }
 0x55f   : > { %v2771_v9 = vpop.f32.mrf.mxu1 }
 0x560   : > { %v1160_v10 = vadd.f32 %v2771_v9, %v1079_v4 }
 0x561   : > { %v1154_v12 = vpop.f32.mrf.mxu1 }
 0x562   : > { %v1194_v13 = vsub.f32 %v1160_v10, %v1191_v6  ;;  %v1155_v14 = vadd.f32 %v1154_v12, %v1074_v5  ;;  %v1451_v6 = vld [vmem:[%s1450_s13] sm:$0xff] }
 0x564   : > { %v1206_v15 = vmul.f32 %v1203_v8, %v1194_v13  ;;  %v1193_v16 = vsub.f32 %v1155_v14, %v1186_v7  ;;  %v1453_v14 = vld [vmem:[%s1450_s13 + $0x10] sm:$0xff] }
 0x566   : > { %v1220_v18 = vadd.f32 %v1217_v17, %v1206_v15  ;;  %v1205_v19 = vmul.f32 %v1198_v11, %v1193_v16  ;;  %v1454_v11 = vld [vmem:[%s1450_s13 + $0x18] sm:$0xff] }
 0x568   : > { %v1222_v21 = vmax.f32 %v1220_v18, 0.0  ;;  %v1219_v22 = vadd.f32 %v1212_v20, %v1205_v19 }
 0x56a   : > { %v1221_v23 = vmax.f32 %v1219_v22, 0.0  ;;  %2773 = vmatpush3.msra.mxu1 %v1222_v21 }
 0x56b   : > { %2774 = vmatprep.subr.mxu1 %v3037_v63 }
 0x56c   : > { %2775 = vmatpush3.msra.mxu1 %v1221_v23 }
 0x56d   : > { %2777 = vmatmul.mubr.msk.f32.vlgmr.msra.gmra.mxu1 %vm1081_vm12, %v1223_v24 }
 0x56e   : > { %2790 = vmatprep.mubr.msk.f32.mxu1 %vm1081_vm12, %v3157_v0 }
 0x62d   : > { %v1299_v26 = vpop.f32.mrf.mxu1 }
 0x62e   : > { %v1300_v27 = vadd.f32 %v1299_v26, %v1228_v25 }
 0x62f   : > { %v2778_v28 = vpop.f32.mrf.mxu1 }
 0x630   : > { %v1303_v29 = vsel %vm1081_vm12, %v1300_v27, -inf }
 0x631   : > { %v1304_v30 = vrot.slane %v1303_v29, 4 }
 0x633   : > { %v1305_v31 = vmax.f32 %v1303_v29, %v1304_v30 }
 0x635   : > { %v1306_v32 = vrot.slane %v1305_v31, 2 }
 0x637   : > { %v1307_v33 = vmax.f32 %v1305_v31, %v1306_v32 }
 0x639   : > { %v1308_v34 = vrot.slane %v1307_v33, 1 }
 0x63b   : > { %v1309_v35 = vmax.f32 %v1307_v33, %v1308_v34 }
 0x63d   : > { %v1310_v36 = vsub.f32 %v1300_v27, %v1309_v35 }
 0x63f   : > { %v1311_v37 = vmul.f32 1.442695, %v1310_v36 }
 0x641   : > { %2931 = vpow2.f32 %v1311_v37 }
 0x64e   : > { %v2932_v38 = vpop.eup %2931 }
 0x64f   : > { %v1313_v39 = vsel %vm1081_vm12, %v2932_v38, 0.0 }
 0x650   : > { %v1314_v40 = vrot.slane %v1313_v39, 4 }
 0x652   : > { %v1315_v41 = vadd.f32 %v1314_v40, %v1313_v39 }
 0x654   : > { %v1316_v42 = vrot.slane %v1315_v41, 2 }
 0x656   : > { %v1317_v43 = vadd.f32 %v1316_v42, %v1315_v41 }
 0x658   : > { %v1318_v44 = vrot.slane %v1317_v43, 1 }
 0x65a   : > { %v1319_v45 = vadd.f32 %v1318_v44, %v1317_v43 }
 0x65c   : > { %2933 = vrcp.f32 %v1319_v45 }
 0x669   : > { %v2934_v46 = vpop.eup %2933 }
 0x66a   : > { %v1321_v47 = vmul.f32 %v2934_v46, %v2932_v38 }
 0x66c   : > { %1322 = vxpose.xlu1.b32.start.end [1/1] (short) (narrow) %v1321_v47, 16 }
 0x6e8   : > { %v1338_v48 = vpop.trf.xlu1 }
 0x6e9   : > { %v1357_v50 = vsel %vm1356_vm14, %v1338_v48, 0.0 }
 0x6ec   : > { %v1339_v49 = vpop.trf.xlu1 }
 0x6ed   : > { %v1358_v51 = vsel %vm1356_vm14, %v1339_v49, 0.0  ;;  %2780 = vmatpush3.msra.mxu0 %v1339_v49  ;;  %2786 = vmatprep.subr.mxu1 %v1339_v49 }
 0x6ee   : > { %v1359_v53 = vadd.f32 %v1358_v51, %v1357_v50  ;;  %2781 = vmatprep.subr.mxu0 %v3037_v63  ;;  %2787 = vmatpush3.msra.mxu1 %v1339_v49  ;;  %v1452_v63 = vld [vmem:[%s1450_s13 + $0x8] sm:$0xff] }
 0x6ef   : > { %2782 = vmatpush3.msra.mxu0 %v1338_v48  ;;  %2788 = vmatprep.subr.mxu1 %v1338_v48 }
 0x6f0   : > { %v1360_v54 = vrot.slane %v1359_v53, 4  ;;  %2789 = vmatpush3.msra.mxu1 %v1338_v48  ;;  %2784 = vmatmul.mubr.msk.f32.vlgmr.msra.gmra.mxu0 %vm1081_vm12, %v1369_v52 }
 0x6f1   : > { %2791 = vmatmul.mubr.msk.f32.vlgmr.msra.gmra.mxu1 %vm1081_vm12, %v3159_v1 }
 0x6f2   : > { %v1361_v55 = vadd.f32 %v1360_v54, %v1359_v53  ;;  %2793 = vmatprep.mubr.msk.f32.mxu1 %vm1081_vm12, %v3161_v2 }
 0x6f4   : > { %v1362_v56 = vrot.slane %v1361_v55, 2 }
 0x6f5   : > { %2794 = vmatmul.mubr.msk.f32.gmra.mxu1 %vm1081_vm12, %v3163_v3 }
 0x6f6   : > { %v1363_v57 = vadd.f32 %v1362_v56, %v1361_v55 }
 0x6f8   : > { %v1364_v58 = vrot.slane %v1363_v57, 1 }
 0x6fa   : > { %v1365_v60 = vadd.f32 %v1364_v58, %v1363_v57 }
 0x6fc   : > { %v1366_v61 = vadd.f32 %v1365_v60, %v1355_v59 }
 0x6fe   : > { %1368 = vst.msk [vmem:[%s1354_s20] sm:$0x1] %vm1367_vm15, %v1366_v61 }
 0x7b0   : > { %v1442_v4 = vpop.f32.mrf.mxu0 }
 0x7b1   : > { %v2792_v5 = vpop.f32.mrf.mxu1  ;;  %v1446_v7 = vadd.f32 %v1442_v4, %v1372_v62 }
 0x7b2   : > { %v1553_v8 = vadd.f32 %v2792_v5, %v1452_v63  ;;  %v2785_v9 = vpop.f32.mrf.mxu0 }
 0x7b3   : > { %v1533_v10 = vpop.f32.mrf.mxu1  ;;  %1448 = vst.msk [vmem:[%s1371_s30] sm:$0x7] %vm1447_vm0, %v1446_v7 }
 0x7b4   : > { %1557 = vst.msk [vmem:[%s1450_s13 + $0x8] sm:$0xff] %vm1356_vm14, %v1553_v8  ;;  %v1552_v12 = vadd.f32 %v1533_v10, %v1451_v6 }
 0x7b5   : > { %v2795_v13 = vpop.f32.mrf.mxu1 }
 0x7b6   : > { %1556 = vst.msk [vmem:[%s1450_s13] sm:$0xff] %vm1356_vm14, %v1552_v12  ;;  %v1555_v15 = vadd.f32 %v2795_v13, %v1454_v11 }
 0x7b7   : > { %v1543_v16 = vpop.f32.mrf.mxu1 }
 0x7b8   : > { %1559 = vst.msk [vmem:[%s1450_s13 + $0x18] sm:$0xff] %vm1356_vm14, %v1555_v15  ;;  %v1554_v17 = vadd.f32 %v1543_v16, %v1453_v14 }
 0x7ba   : > { %1558 = vst.msk [vmem:[%s1450_s13 + $0x10] sm:$0xff] %vm1356_vm14, %v1554_v17 }
 0x7bb PF: > { %p2642_p12 = scmp.ne.s32.totalorder %s3019_s22, 3 }
 0x7bc   : > { %s1564_s16 = scalar_lea.vmem (!%p2642_p12), [#allocation6], %s3015_s21  ;;  %s2643_s18 = sshll.u32 (!%p2642_p12), %s3015_s21, 2 }
 0x7bd   : > { %1563 = sbr.rel (%p2642_p12) target bundleno = 3049 (0xbe9), region = 88  ;;  %s2644_s20 = sshll.u32 (!%p2642_p12), %s3015_s21, 5 }
 0x7be   : > { %s1570_s29 = scalar_lea.vmem (!%p2642_p12), [#allocation7], %s2643_s18  ;;  %s1580_s26 = scalar_lea.vmem (!%p2642_p12), [#allocation8], %s2644_s20 }
 0x7bf   : > { %p2514_p13 = scmp.eq.s32.totalorder (!%p2642_p12), %s3015_s21, 1 }
 0x7c2   : > { %v1880_v18 = vld [vmem:[%s3555_s3] sm:$0xff]  ;;  %v1975_v19 = vld [vmem:[#allocation2 + $0x8] sm:$0xff]  ;;  %v1979_v20 = vld [vmem:[#allocation3 + $0x8] sm:$0xff]  ;;  %v3039_v21 = vmov 0   ;;  %v3040_v33 = vmov 0.0   ;;  %v1573_v36 = vlaneseq  ;;  %vm3041_vm1 = vmmov 0  }
 0x7c3   : > { %2936 = vset.pattern.permute.xlu1 %v3039_v21  ;;  %v1977_v22 = vmul.f32 0.03125, %v1975_v19  ;;  %v1981_v23 = vmul.f32 0.03125, %v1979_v20  ;;  %v1974_v24 = vld [vmem:[#allocation2] sm:$0xff]  ;;  %v1978_v25 = vld [vmem:[#allocation3] sm:$0xff]  ;;  %2807 = vmatprep.subr.mxu1 %v3040_v33  ;;  %v2019_v38 = vld [vmem:[%s3557_s5 + $0x8] sm:$0xff]  ;;  %vm1765_vm2 = vcmask 1042432  }
 0x7c4   : > { %1884 = vperm.xlu1 %2936, %v1880_v18   ;;  %v1976_v26 = vmul.f32 0.03125, %v1974_v24  ;;  %v1980_v27 = vmul.f32 0.03125, %v1978_v25  ;;  %v1565_v28 = vld [vmem:[%s1564_s16] sm:$0x1]  ;;  %2796 = vmatprep.subr.mxu0 %v3040_v33  ;;  %v3353_v39 = vshrl.u32 %v1573_v36, 7  ;;  %v2131_v40 = vld [vmem:[#allocation4 + $0x8] sm:$0xff] }
 0x7c5   : > { %v1983_v29 = vmul.f32 %v1977_v22, %v1977_v22  ;;  %v1566_v30 = vmax.f32 %v1565_v28, 0.0001  ;;  %2809 = vmatprep.mubr.msk.f32.mxu1 %vm3041_vm1, %v3040_v33  ;;  %2804 = vmatprep.mubr.msk.f32.mxu0 %vm3041_vm1, %v3040_v33  ;;  %v3357_v42 = vmul.f32 0.03125, %v2131_v40  ;;  %v1571_v43 = vld [vmem:[%s1570_s29] sm:$0x7]  ;;  %v2135_v44 = vld [vmem:[#allocation5 + $0x8] sm:$0xff] }
 0x7c6   : > { %v1982_v31 = vmul.f32 %v1976_v26, %v1976_v26  ;;  %v1575_v41 = vsub.s32 0, %v3353_v39  ;;  %v1581_v46 = vld [vmem:[%s1580_s26] sm:$0xff]  ;;  %v1582_v47 = vld [vmem:[%s1580_s26 + $0x8] sm:$0xff]  ;;  %v1583_v48 = vld [vmem:[%s1580_s26 + $0x10] sm:$0xff]  ;;  %v2137_v52 = vmul.f32 0.03125, %v2135_v44  ;;  %vm1593_vm3 = vcmask 64512  }
 0x7c7   : > { %v1985_v32 = vsub.f32 %v1981_v23, %v1983_v29  ;;  %2939 = vrcp.f32 %v1566_v30  ;;  %v1584_v50 = vld [vmem:[%s1580_s26 + $0x18] sm:$0xff]  ;;  %v1991_v51 = vld [vmem:[%s3556_s4 + $0x8] sm:$0xff]  ;;  %v2139_v53 = vmul.f32 %v3357_v42, %v3357_v42  ;;  %v1990_v59 = vld [vmem:[%s3556_s4] sm:$0xff]  ;;  %vm1761_vm4 = vcmask 23552  }
 0x7c8   : > { %2001 = vperm.xlu1 %2936, %v1977_v22   ;;  %v1984_v34 = vsub.f32 %v1980_v27, %v1982_v31  ;;  %v2018_v16 = vld [vmem:[%s3557_s5] sm:$0xff]  ;;  %v2037_v20 = vld [vmem:[%s3559_s7 + $0x8] sm:$0xff]  ;;  %v2134_v22 = vld [vmem:[#allocation5] sm:$0xff]  ;;  %vm1687_vm5 = vcmask 261120   ;;  %vm2048_vm6 = vcmask 130048   ;;  %vm1876_vm8 = vcmask 0  }
 0x7c9   : > { %v1987_v35 = vadd.f32 1e-05, %v1985_v32  ;;  %v2141_v6 = vsub.f32 %v2137_v52, %v2139_v53  ;;  %v2130_v18 = vld [vmem:[#allocation4] sm:$0xff]  ;;  %vm2356_vm9 = vcmask 122880  }
 0x7ca   : > { %v1986_v37 = vadd.f32 1e-05, %v1984_v34  ;;  %v2132_v24 = vmul.f32 0.03125, %v2130_v18  ;;  %v2036_v28 = vld [vmem:[%s3559_s7] sm:$0xff] }
 0x7cb   : > { %2941 = vrsqrt.f32 %v1987_v35  ;;  %v2143_v15 = vadd.f32 1e-05, %v2141_v6  ;;  %v2174_v52 = vld [vmem:[%s3561_s9] sm:$0xff] }
 0x7cc   : > { %2943 = vrsqrt.f32 %v1986_v37  ;;  %1996 = vperm.xlu1 %2936, %v1976_v26   ;;  %v2136_v26 = vmul.f32 0.03125, %v2134_v22  ;;  %v2138_v27 = vmul.f32 %v2132_v24, %v2132_v24 }
 0x7cd   : > { %2945 = vrsqrt.f32 %v2143_v15 }
 0x7ce   : > { %v2140_v31 = vsub.f32 %v2136_v26, %v2138_v27 }
 0x7d0   : > { %2027 = vperm.xlu1 %2936, %v2019_v38   ;;  %v2142_v35 = vadd.f32 1e-05, %v2140_v31  ;;  %v2147_v38 = vld [vmem:[%s3560_s8 + $0x8] sm:$0xff] }
 0x7d4   : > { %v2940_v45 = vpop.eup %2939 }
 0x7d5   : > { %v1576_v49 = vrot.slane %v2940_v45, %v1575_v41 }
 0x7d7   : > { %v1578_v54 = vmul.f32 %v1576_v49, %v1571_v43  ;;  %v3366_v55 = vmul.f32 %v1581_v46, %v1576_v49  ;;  %v3368_v56 = vmul.f32 %v1582_v47, %v1576_v49  ;;  %v1587_v57 = vmul.f32 %v1583_v48, %v1576_v49  ;;  %v2175_v43 = vld [vmem:[%s3561_s9 + $0x8] sm:$0xff]  ;;  %v2146_v48 = vld [vmem:[%s3560_s8] sm:$0xff] }
 0x7d8   : > { %v2942_v58 = vpop.eup %2941  ;;  %v1588_v60 = vmul.f32 %v1584_v50, %v1576_v49  ;;  %v1881_v47 = vld [vmem:[%s3555_s3 + $0x8] sm:$0xff] }
 0x7d9   : > { %v2944_v61 = vpop.eup %2943  ;;  %1645 = vxpose.xlu0.b32.start.end [1/1] (short) (narrow) %v1578_v54, 8  ;;  %v1993_v62 = vmul.f32 %v2942_v58, %v1991_v51  ;;  %v1589_v63 = vmul.f32 %v3366_v55, %v3366_v55  ;;  %v1590_v4 = vmul.f32 %v3368_v56, %v3368_v56  ;;  %v1591_v5 = vmul.f32 %v1587_v57, %v1587_v57  ;;  %v1879_v58 = vld [vmem:[%s3554_s2 + $0x8] sm:$0xff] }
 0x7da   : > { %v1592_v7 = vmul.f32 %v1588_v60, %v1588_v60  ;;  %2808 = vmatpush3.msk.msra.mxu1 %vm1765_vm2, %v1578_v54  ;;  %v1992_v8 = vmul.f32 %v2944_v61, %v1990_v59  ;;  %v2946_v37 = vpop.eup %2945  ;;  %v1878_v54 = vld [vmem:[%s3554_s2] sm:$0xff] }
 0x7db   : > { %2013 = vperm.xlu1 %2936, %v1993_v62   ;;  %v1594_v9 = vsel %vm1593_vm3, %v1589_v63, 0.0  ;;  %v1595_v10 = vsel %vm1593_vm3, %v1590_v4, 0.0  ;;  %v1597_v11 = vsel %vm1593_vm3, %v1591_v5, 0.0  ;;  %2812 = vmatprep.subr.mxu1 %v3163_v3  ;;  %v2149_v40 = vmul.f32 %v2946_v37, %v2147_v38 }
 0x7dc   : > { %v1596_v12 = vadd.f32 %v1595_v10, %v1594_v9  ;;  %v1599_v13 = vsel %vm1593_vm3, %v1592_v7, 0.0 }
 0x7de   : > { %v1598_v14 = vadd.f32 %v1597_v11, %v1596_v12 }
 0x7df   : > { %2008 = vperm.xlu1 %2936, %v1992_v8  }
 0x7e0   : > { %v1600_v17 = vadd.f32 %v1599_v13, %v1598_v14 }
 0x7e2   : > { %v1601_v19 = vrot.slane %v1600_v17, 4 }
 0x7e3   : > { %2022 = vperm.xlu1 %2936, %v2018_v16   ;;  %v2034_v16 = vld [vmem:[%s3558_s6] sm:$0xff] }
 0x7e4   : > { %v1602_v23 = vadd.f32 %v1601_v19, %v1600_v17 }
 0x7e6   : > { %v1603_v25 = vrot.slane %v1602_v23, 2 }
 0x7e7   : > { %2045 = vperm.xlu1 %2936, %v2037_v20  }
 0x7e8   : > { %v1604_v29 = vadd.f32 %v1603_v25, %v1602_v23 }
 0x7ea   : > { %v1605_v30 = vrot.slane %v1604_v29, 1 }
 0x7eb   : > { %2040 = vperm.xlu1 %2936, %v2036_v28  }
 0x7ec   : > { %v1606_v32 = vadd.f32 %v1605_v30, %v1604_v29 }
 0x7ee   : > { %v1607_v34 = vmax.f32 %v1606_v32, 1e-24 }
 0x7ef   : > { %2157 = vperm.xlu1 %2936, %v3357_v42  }
 0x7f0   : > { %2947 = vrsqrt.f32 %v1607_v34  ;;  %v2035_v34 = vld [vmem:[%s3558_s6 + $0x8] sm:$0xff] }
 0x7f1   : > { %2949 = vrsqrt.f32 %v2142_v35  ;;  %v1683_v35 = vand.u32 127, %v1573_v36 }
 0x7f3   : > { %2152 = vperm.xlu1 %2936, %v2132_v24   ;;  %vm1684_vm7 = vcmp.eq.s32.totalorder %v3353_v39, %v1683_v35 }
 0x7f4   : > { %v2645_v37 = vsel %vm1684_vm7, 1.0, %v3040_v33 }
 0x7f7   : > { %2169 = vperm.xlu1 %2936, %v2149_v40  }
 0x7fb   : > { %2183 = vperm.xlu1 %2936, %v2175_v43  }
 0x7fd   : > { %v2948_v44 = vpop.eup %2947 }
 0x7fe   : > { %v1612_v45 = vmul.f32 %v2948_v44, %v1588_v60  ;;  %v2950_v46 = vpop.eup %2949  ;;  %v1611_v42 = vmul.f32 %v2948_v44, %v1587_v57  ;;  %v1610_v49 = vmul.f32 %v2948_v44, %v3368_v56  ;;  %v1609_v51 = vmul.f32 %v2948_v44, %v3366_v55 }
 0x7ff   : > { %v2148_v50 = vmul.f32 %v2950_v46, %v2146_v48  ;;  %v3042_v57 = vmov 1   ;;  %v3043_v60 = vmov 2  }
 0x800   : > { %2797 = vmatpush3.msra.mxu0 %v1612_v45 }
 0x801   : > { %2798 = vmatprep.subr.mxu0 %v3040_v33 }
 0x802   : > { %2935 = vset.pattern.permute.xlu0 %v3039_v21  ;;  %2799 = vmatpush3.msra.mxu0 %v1611_v42  ;;  %v2191_v21 = vld [vmem:[%s3563_s11] sm:$0xff] }
 0x803   : > { %1889 = vperm.xlu0 %2935, %v1881_v47   ;;  %2800 = vmatprep.subr.mxu0 %v3040_v33 }
 0x804   : > { %2801 = vmatpush3.msra.mxu0 %v1610_v49 }
 0x805   : > { %2802 = vmatprep.subr.mxu0 %v3040_v33 }
 0x806   : > { %2803 = vmatpush3.msra.mxu0 %v1609_v51 }
 0x807   : > { %2164 = vperm.xlu0 %2935, %v2148_v50   ;;  %2837 = vmatprep.subr.mxu0 %v3040_v33 }
 0x80b   : > { %2178 = vperm.xlu0 %2935, %v2174_v52  }
 0x80f   : > { %2194 = vperm.xlu0 %2935, %v2191_v21  }
 0x824   : > { %1613 = vxpose.xlu1.b32.start [1/4] (short) (narrow) %v1609_v51, 8 }
 0x828   : > { %1614 = vxpose.xlu1.b32.cont [2/4] (short) (narrow) %v1610_v49, 8 }
 0x82c   : > { %1615 = vxpose.xlu1.b32.cont [3/4] (short) (narrow) %v1611_v42, 8 }
 0x830   : > { %1616 = vxpose.xlu1.b32.end [4/4] (short) (narrow) %v1612_v45, 8 }
 0x83f   : > { %v1885_v53 = vpop.permute.xlu1 %1884 }
 0x843   : > { %v2002_v56 = vpop.permute.xlu1 %2001 }
 0x847   : > { %v1997_v59 = vpop.permute.xlu1 %1996 }
 0x84b   : > { %v2028_v61 = vpop.permute.xlu1 %2027 }
 0x855   : > { %v1661_v55 = vpop.trf.xlu0 }
 0x856   : > { %2293 = vperm.xlu0 %2935, %v1661_v55   ;;  %2810 = vmatmul.mubr.msk.f32.vlgmr.msra.gmra.mxu1 %vm1761_vm4, %v1661_v55  ;;  %v2014_v62 = vpop.permute.xlu1 %2013  ;;  %v2321_v4 = vmul.f32 %v1661_v55, %v1661_v55 }
 0x857   : > { %2813 = vmatpush3.msra.mxu1 %v3163_v3  ;;  %2820 = vmatprep.mubr.msk.f32.mxu1 %vm1687_vm5, %v1878_v54 }
 0x858   : > { %2814 = vmatprep.subr.mxu1 %v3161_v2  ;;  %v2323_v6 = vsel %vm1761_vm4, %v2321_v4, 0.0 }
 0x859   : > { %2815 = vmatpush3.msra.mxu1 %v3161_v2 }
 0x85a   : > { %2816 = vmatprep.subr.mxu1 %v3159_v1  ;;  %2937 = vset.pattern.permute.xlu0 %v3042_v57  ;;  %v2009_v63 = vpop.permute.xlu1 %2008 }
 0x85b   : > { %2817 = vmatpush3.msra.mxu1 %v3159_v1  ;;  %2302 = vperm.xlu0 %2937, %v1661_v55  }
 0x85c   : > { %2818 = vmatprep.subr.mxu1 %v3157_v0 }
 0x85d   : > { %2819 = vmatpush3.msra.mxu1 %v3157_v0 }
 0x85e   : > { %2821 = vmatmul.mubr.msk.f32.vlgmr.msra.gmra.mxu1 %vm1687_vm5, %v1879_v58  ;;  %v2023_v5 = vpop.permute.xlu1 %2022 }
 0x85f   : > { %2938 = vset.pattern.permute.xlu0 %v3043_v60  ;;  %2827 = vmatprep.mubr.msk.f32.mxu1 %vm2048_vm6, %v2034_v16 }
 0x862   : > { %v3435_v7 = vpop.permute.xlu1 %2045 }
 0x866   : > { %v3437_v8 = vpop.permute.xlu1 %2040 }
 0x86a   : > { %v3439_v9 = vpop.permute.xlu1 %2157 }
 0x86e   : > { %v3441_v10 = vpop.permute.xlu1 %2152 }
 0x872   : > { %v3443_v11 = vpop.permute.xlu1 %2169 }
 0x876   : > { %v3445_v12 = vpop.permute.xlu1 %2183 }
 0x87a   : > { %2324 = vadd.xlane.f32.xlu0 %v2323_v6 }
 0x87e   : > { %v1890_v19 = vpop.permute.xlu0 %1889 }
 0x882   : > { %v2165_v51 = vpop.permute.xlu0 %2164 }
 0x8a0   : > { %v1629_v13 = vpop.trf.xlu1 }
 0x8a1   : > { %2805 = vmatmul.mubr.msk.f32.vlgmr.msra.gmra.mxu0 %vm1687_vm5, %v1629_v13  ;;  %v2462_v14 = vmul.f32 %v1629_v13, %v1629_v13 }
 0x8a2   : > { %2838 = vmatpush3.msra.mxu0 %v3163_v3  ;;  %2845 = vmatprep.mubr.msk.f32.mxu0 %vm3041_vm1, %v3040_v33 }
 0x8a3   : > { %v2463_v15 = vsel %vm1687_vm5, %v2462_v14, 0.0  ;;  %2839 = vmatprep.subr.mxu0 %v3040_v33 }
 0x8a4   : > { %2464 = vadd.xlane.f32.xlu0 %v2463_v15  ;;  %2840 = vmatpush3.msra.mxu0 %v3161_v2 }
 0x8a5   : > { %2841 = vmatprep.subr.mxu0 %v3040_v33 }
 0x8a6   : > { %2842 = vmatpush3.msra.mxu0 %v3159_v1 }
 0x8a7   : > { %2843 = vmatprep.subr.mxu0 %v3040_v33 }
 0x8a8   : > { %2844 = vmatpush3.msra.mxu0 %v3157_v0 }
 0x8a9   : > { %2846 = vmatmul.mubr.msk.f32.vlgmr.msra.gmra.mxu0 %vm1687_vm5, %v1629_v13 }
 0x8ba   : > { %2312 = vperm.xlu0 %2938, %v1661_v55  }
 0x916   : > { %v1835_v17 = vpop.f32.mrf.mxu1 }
 0x917   : > { %v1855_v40 = vsub.f32 %v1835_v17, %v2645_v37  ;;  %v1872_v17 = vld [vmem:[#allocation9] sm:$0x1] }
 0x918   : > { %v2811_v18 = vpop.f32.mrf.mxu1 }
 0x919   : > { %v1856_v46 = vand.u32 2147483647, %v1855_v40 }
 0x91b   : > { %v1857_v47 = vsel %vm1593_vm3, %v1856_v46, 0.0  ;;  %v2290_v46 = vld [vmem:[%s3155_s19] sm:$0x7] }
 0x91e   : > { %v2822_v20 = vpop.f32.mrf.mxu1 }
 0x91f   : > { %v1971_v22 = vadd.f32 %v2822_v20, %v1890_v19  ;;  %v2369_v19 = vmul.f32 %v3157_v0, %v3157_v0  ;;  %v2370_v20 = vmul.f32 %v3159_v1, %v3159_v1 }
 0x920   : > { %v1965_v23 = vpop.f32.mrf.mxu1 }
 0x921   : > { %v2005_v24 = vsub.f32 %v1971_v22, %v2002_v56  ;;  %v1966_v25 = vadd.f32 %v1965_v23, %v1885_v53  ;;  %v2371_v22 = vmul.f32 %v3161_v2, %v3161_v2  ;;  %v2373_v23 = vsel %vm2048_vm6, %v2369_v19, 0.0 }
 0x923   : > { %v2017_v26 = vmul.f32 %v2014_v62, %v2005_v24  ;;  %v2004_v27 = vsub.f32 %v1966_v25, %v1997_v59  ;;  %v2179_v62 = vpop.permute.xlu0 %2178  ;;  %v2374_v24 = vsel %vm2048_vm6, %v2370_v20, 0.0 }
 0x924   : > { %v2375_v25 = vadd.f32 %v2374_v24, %v2373_v23 }
 0x925   : > { %v2016_v28 = vmul.f32 %v2009_v63, %v2004_v27  ;;  %v2031_v29 = vadd.f32 %v2028_v61, %v2017_v26  ;;  %v2372_v26 = vmul.f32 %v3163_v3, %v3163_v3  ;;  %v2376_v27 = vsel %vm2048_vm6, %v2371_v22, 0.0 }
 0x926   : > { %v2307_v3 = vsub.s32 1, %v3353_v39 }
 0x927   : > { %v2033_v30 = vmax.f32 %v2031_v29, 0.0  ;;  %v2030_v31 = vadd.f32 %v2023_v5, %v2016_v28  ;;  %v2377_v28 = vadd.f32 %v2376_v27, %v2375_v25  ;;  %v2378_v29 = vsel %vm2048_vm6, %v2372_v26, 0.0 }
 0x929   : > { %2823 = vmatprep.subr.mxu1 %v2033_v30  ;;  %v2032_v32 = vmax.f32 %v2030_v31, 0.0  ;;  %v2379_v0 = vadd.f32 %v2378_v29, %v2377_v28 }
 0x92a   : > { %2824 = vmatpush3.msra.mxu1 %v2033_v30 }
 0x92b   : > { %2825 = vmatprep.subr.mxu1 %v2032_v32  ;;  %v2380_v30 = vrot.slane %v2379_v0, 4 }
 0x92c   : > { %2826 = vmatpush3.msra.mxu1 %v2032_v32  ;;  %v2195_v32 = vpop.permute.xlu0 %2194 }
 0x92d   : > { %2828 = vmatmul.mubr.msk.f32.vlgmr.msra.gmra.mxu1 %vm2048_vm6, %v2035_v34  ;;  %2830 = vmatprep.subr.mxu1 %v3040_v33  ;;  %v2381_v1 = vadd.f32 %v2380_v30, %v2379_v0 }
 0x92e   : > { %2834 = vmatprep.mubr.msk.f32.mxu1 %vm3041_vm1, %v3040_v33 }
 0x92f   : > { %v2382_v31 = vrot.slane %v2381_v1, 2 }
 0x930   : > { %v2294_v34 = vpop.permute.xlu0 %2293 }
 0x931   : > { %v2383_v2 = vadd.f32 %v2382_v31, %v2381_v1 }
 0x933   : > { %v2384_v35 = vrot.slane %v2383_v2, 1 }
 0x961   : > { %v1757_v38 = vpop.f32.mrf.mxu0 }
 0x962   : > { %v1839_v43 = vsub.f32 %v1757_v38, %v2645_v37  ;;  %v2385_v37 = vadd.f32 %v2384_v35, %v2383_v2  ;;  %v2303_v38 = vpop.permute.xlu0 %2302 }
 0x963   : > { %v2806_v44 = vpop.f32.mrf.mxu0 }
 0x964   : > { %v1840_v45 = vand.u32 2147483647, %v1839_v43  ;;  %v2386_v40 = vmax.f32 %v2385_v37, 1e-24 }
 0x966   : > { %v1841_v42 = vsel %vm1593_vm3, %v1840_v45, 0.0  ;;  %v2325_v43 = vpop.xlane.xlu0 %2324  ;;  %2951 = vrsqrt.f32 %v2386_v40  ;;  %v2317_v45 = vsub.s32 2, %v3353_v39 }
 0x967   : > { %1842 = vadd.xlane.f32.xlu1 %v1841_v42  ;;  %v2308_v42 = vrot.slane %v2290_v46, %v2307_v3 }
 0x969   : > { %v3475_v48 = vpop.f32.mrf.mxu0 }
 0x96a   : > { %v2465_v44 = vpop.xlane.xlu0 %2464 }
 0x96b   : > { %1858 = vadd.xlane.f32.xlu1 %v1857_v47  ;;  %v2847_v49 = vpop.f32.mrf.mxu0  ;;  %v2299_v47 = vrot.slane %v2290_v46, %v1575_v41 }
 0x96c   : > { %v2318_v49 = vrot.slane %v2290_v46, %v2317_v45 }
 0x9ed   : > { %v2829_v36 = vpop.f32.mrf.mxu1 }
 0x9ee   : > { %v2127_v50 = vadd.f32 %v2829_v36, %v3435_v7  ;;  %v2313_v36 = vpop.permute.xlu0 %2312 }
 0x9ef   : > { %v2121_v52 = vpop.f32.mrf.mxu1 }
 0x9f0   : > { %v2161_v21 = vsub.f32 %v2127_v50, %v3439_v9  ;;  %v2122_v53 = vadd.f32 %v2121_v52, %v3437_v8  ;;  %v1843_v54 = vpop.xlane.xlu1 %1842  ;;  %v2190_v8 = vld [vmem:[%s3562_s10] sm:$0xff]  ;;  %v2309_v50 = vmul.f32 %v2308_v42, %v2303_v38  ;;  %v2319_v52 = vmul.f32 %v2318_v49, %v2313_v36 }
 0x9f1   : > { %v1844_v55 = vrot.slane %v1843_v54, 4 }
 0x9f2   : > { %v2173_v56 = vmul.f32 %v3443_v11, %v2161_v21  ;;  %v2160_v57 = vsub.f32 %v2122_v53, %v3441_v10  ;;  %v2952_v21 = vpop.eup %2951 }
 0x9f3   : > { %v1845_v58 = vadd.f32 %v1844_v55, %v1843_v54  ;;  %v2461_v55 = vmul.f32 %v2952_v21, %v3475_v48 }
 0x9f4   : > { %v2187_v59 = vadd.f32 %v3445_v12, %v2173_v56  ;;  %v2172_v60 = vmul.f32 %v2165_v51, %v2160_v57  ;;  %v1859_v61 = vpop.xlane.xlu1 %1858  ;;  %v2300_v51 = vmul.f32 %v2299_v47, %v2294_v34 }
 0x9f5   : > { %v1846_v63 = vrot.slane %v1845_v58, 2  ;;  %v1860_v4 = vrot.slane %v1859_v61, 4  ;;  %v2466_v57 = vmul.f32 2.0, %v2461_v55 }
 0x9f6   : > { %v2189_v5 = vmax.f32 %v2187_v59, 0.0  ;;  %v2186_v6 = vadd.f32 %v2179_v62, %v2172_v60  ;;  %v2310_v53 = vadd.f32 %v2309_v50, %v2300_v51 }
 0x9f7   : > { %v1861_v7 = vadd.f32 %v1860_v4, %v1859_v61  ;;  %v1847_v9 = vadd.f32 %v1846_v63, %v1845_v58  ;;  %v2467_v59 = vsub.f32 %v2466_v57, %v2465_v44 }
 0x9f8   : > { %v2188_v13 = vmax.f32 %v2186_v6, 0.0  ;;  %2831 = vmatpush3.msra.mxu1 %v2189_v5  ;;  %v2320_v54 = vadd.f32 %v2319_v52, %v2310_v53 }
 0x9f9   : > { %v1862_v11 = vrot.slane %v1861_v7, 2  ;;  %2832 = vmatprep.subr.mxu1 %v3040_v33  ;;  %v1848_v10 = vrot.slane %v1847_v9, 1  ;;  %v2468_v61 = vmul.f32 100.0, %v2467_v59 }
 0x9fa   : > { %2833 = vmatpush3.msra.mxu1 %v2188_v13  ;;  %v2326_v56 = vmul.f32 2.0, %v2320_v54 }
 0x9fb   : > { %2835 = vmatmul.mubr.msk.f32.vlgmr.msra.gmra.mxu1 %vm2048_vm6, %v2190_v8  ;;  %v1849_v12 = vadd.f32 %v1848_v10, %v1847_v9  ;;  %v1863_v14 = vadd.f32 %v1862_v11, %v1861_v7  ;;  %v2469_v39 = vsel %vm2048_vm6, %v2468_v61, -inf }
 0x9fc   : > { %v2327_v58 = vsub.f32 %v2326_v56, %v2325_v43  ;;  %v2470_v63 = vrot.slane %v2469_v39, 4 }
 0x9fd   : > { %2848 = vpush %v1849_v12  ;;  %v1864_v15 = vrot.slane %v1863_v14, 1 }
 0x9fe   : > { %v2328_v60 = vmul.f32 100.0, %v2327_v58  ;;  %v2471_v5 = vmax.f32 %v2469_v39, %v2470_v63 }
 0x9ff   : > { %v1865_v16 = vadd.f32 %v1864_v15, %v1863_v14 }
 0xa00   : > { %v2329_v62 = vsel %vm2048_vm6, %v2328_v60, -inf  ;;  %v2472_v7 = vrot.slane %v2471_v5, 2 }
 0xa01   : > { %2850 = vpush %v1865_v16  ;;  %v2330_v41 = vrot.slane %v2329_v62, 4 }
 0xa02   : > { %v2473_v11 = vmax.f32 %v2471_v5, %v2472_v7 }
 0xa03   : > { %v2331_v4 = vmax.f32 %v2329_v62, %v2330_v41 }
 0xa04   : > { %v2474_v16 = vrot.slane %v2473_v11, 1 }
 0xa05   : > { %v2332_v6 = vrot.slane %v2331_v4, 2 }
 0xa06   : > { %v2475_v19 = vmax.f32 %v2473_v11, %v2474_v16 }
 0xa07   : > { %v2333_v8 = vmax.f32 %v2331_v4, %v2332_v6 }
 0xa08   : > { %v2476_v24 = vsub.f32 %v2468_v61, %v2475_v19 }
 0xa09   : > { %v2334_v14 = vrot.slane %v2333_v8, 1 }
 0xa0a   : > { %v2477_v28 = vmul.f32 1.442695, %v2476_v24 }
 0xa2e   : > { %s2849_s26 = spop %2848 }
 0xa2f   : > { %s1853_s30 = smul.f32 0.015625, %s2849_s26 }
 0xa31   : > { %s1854_s13 = smul.f32 0.0001, %s1853_s30 }
 0xa32   : > { %s2851_s14 = spop %2850 }
 0xa33   : > { %s1869_s15 = smul.f32 0.015625, %s2851_s14 }
 0xa35   : > { %s1870_s16 = smul.f32 1e-07, %s1869_s15 }
 0xa37   : > { %s1871_s22 = sadd.f32 %s1870_s16, %s1854_s13 }
 0xa39   : > { %s1873_s17 = smul.f32 0.5, %s1871_s22 }
 0xa3b   : > { %v1874_v33 = vstv %s1873_s17 }
 0xa3c   : > { %v1875_v18 = vadd.f32 %v1874_v33, %v1872_v17  ;;  %v2335_v33 = vmax.f32 %v2333_v8, %v2334_v14 }
 0xa3e   : > { %1877 = vst.msk [vmem:[#allocation9] sm:$0x1] %vm1876_vm8, %v1875_v18  ;;  %v2336_v22 = vsub.f32 %v2328_v60, %v2335_v33 }
 0xa40   : > { %v2337_v26 = vmul.f32 1.442695, %v2336_v22 }
 0xabb   : > { %v2266_v9 = vpop.f32.mrf.mxu1 }
 0xabc   : > { %v2267_v13 = vadd.f32 %v2266_v9, %v2195_v32 }
 0xabd   : > { %v2836_v48 = vpop.f32.mrf.mxu1 }
 0xabe   : > { %v2270_v10 = vsel %vm2048_vm6, %v2267_v13, -inf }
 0xabf   : > { %v2271_v12 = vrot.slane %v2270_v10, 4 }
 0xac1   : > { %v2272_v15 = vmax.f32 %v2270_v10, %v2271_v12 }
 0xac3   : > { %v2273_v17 = vrot.slane %v2272_v15, 2 }
 0xac5   : > { %v2274_v18 = vmax.f32 %v2272_v15, %v2273_v17 }
 0xac7   : > { %v2275_v20 = vrot.slane %v2274_v18, 1 }
 0xac9   : > { %v2276_v23 = vmax.f32 %v2274_v18, %v2275_v20 }
 0xacb   : > { %v2277_v25 = vsub.f32 %v2267_v13, %v2276_v23 }
 0xacd   : > { %v2278_v27 = vmul.f32 1.442695, %v2277_v25 }
 0xacf   : > { %2953 = vpow2.f32 %v2278_v27 }
 0xad0   : > { %2955 = vpow2.f32 %v2337_v26 }
 0xad1   : > { %2957 = vpow2.f32 %v2477_v28  ;;  %v2508_v28 = vld [vmem:[#allocation9] sm:$0x1] }
 0xadc   : > { %v2954_v29 = vpop.eup %2953 }
 0xadd   : > { %v2280_v0 = vsel %vm2048_vm6, %v2954_v29, 0.0  ;;  %v2956_v30 = vpop.eup %2955 }
 0xade   : > { %v2281_v1 = vrot.slane %v2280_v0, 4  ;;  %v2958_v31 = vpop.eup %2957  ;;  %v2347_v2 = vsel %vm2048_vm6, %v2956_v30, 0.0 }
 0xadf   : > { %v2487_v34 = vsel %vm2048_vm6, %v2958_v31, 0.0  ;;  %v2348_v38 = vrot.slane %v2347_v2, 4 }
 0xae0   : > { %v2282_v32 = vadd.f32 %v2281_v1, %v2280_v0  ;;  %v2488_v40 = vrot.slane %v2487_v34, 4 }
 0xae1   : > { %v2349_v44 = vadd.f32 %v2348_v38, %v2347_v2 }
 0xae2   : > { %v2283_v35 = vrot.slane %v2282_v32, 2  ;;  %v2489_v45 = vadd.f32 %v2488_v40, %v2487_v34 }
 0xae3   : > { %v2350_v46 = vrot.slane %v2349_v44, 2 }
 0xae4   : > { %v2284_v37 = vadd.f32 %v2283_v35, %v2282_v32  ;;  %v2490_v42 = vrot.slane %v2489_v45, 2 }
 0xae5   : > { %v2351_v47 = vadd.f32 %v2350_v46, %v2349_v44 }
 0xae6   : > { %v2285_v43 = vrot.slane %v2284_v37, 1  ;;  %v2491_v49 = vadd.f32 %v2490_v42, %v2489_v45 }
 0xae7   : > { %v2352_v36 = vrot.slane %v2351_v47, 1 }
 0xae8   : > { %v2286_v3 = vadd.f32 %v2285_v43, %v2284_v37  ;;  %v2492_v50 = vrot.slane %v2491_v49, 1 }
 0xae9   : > { %v2353_v21 = vadd.f32 %v2352_v36, %v2351_v47 }
 0xaea   : > { %2959 = vlog2.f32 %v2286_v3  ;;  %v2493_v53 = vadd.f32 %v2492_v50, %v2491_v49 }
 0xaeb   : > { %2961 = vrcp.f32 %v2353_v21 }
 0xaec   : > { %2963 = vrcp.f32 %v2493_v53 }
 0xaf7   : > { %v2960_v51 = vpop.eup %2959 }
 0xaf8   : > { %v2288_v52 = vmul.f32 0.6931472, %v2960_v51  ;;  %v2962_v7 = vpop.eup %2961 }
 0xaf9   : > { %v2964_v8 = vpop.eup %2963 }
 0xafa   : > { %v2289_v54 = vsub.f32 %v2277_v25, %v2288_v52 }
 0xafc   : > { %v2339_v55 = vmul.f32 %v2956_v30, %v2289_v54  ;;  %v2479_v56 = vmul.f32 %v2958_v31, %v2289_v54 }
 0xafe   : > { %v2340_v57 = vsel %vm2048_vm6, %v2339_v55, 0.0  ;;  %v2480_v58 = vsel %vm2048_vm6, %v2479_v56, 0.0 }
 0xaff   : > { %v2341_v59 = vrot.slane %v2340_v57, 4  ;;  %v2481_v60 = vrot.slane %v2480_v58, 4 }
 0xb01   : > { %v2482_v61 = vadd.f32 %v2481_v60, %v2480_v58  ;;  %v2342_v62 = vadd.f32 %v2341_v59, %v2340_v57 }
 0xb03   : > { %v2483_v39 = vrot.slane %v2482_v61, 2  ;;  %v2343_v41 = vrot.slane %v2342_v62, 2 }
 0xb05   : > { %v2484_v63 = vadd.f32 %v2483_v39, %v2482_v61  ;;  %v2344_v4 = vadd.f32 %v2343_v41, %v2342_v62 }
 0xb07   : > { %v2485_v5 = vrot.slane %v2484_v63, 1  ;;  %v2345_v6 = vrot.slane %v2344_v4, 1 }
 0xb09   : > { %v2486_v9 = vadd.f32 %v2485_v5, %v2484_v63  ;;  %v2346_v13 = vadd.f32 %v2345_v6, %v2344_v4 }
 0xb0b   : > { %v2495_v48 = vmul.f32 %v2964_v8, %v2486_v9  ;;  %v2355_v11 = vmul.f32 %v2962_v7, %v2346_v13 }
 0xb0d   : > { %v2496_v10 = vsel %vm2356_vm9, %v2495_v48, 0.0  ;;  %v2357_v12 = vsel %vm2356_vm9, %v2355_v11, 0.0 }
 0xb0e   : > { %2497 = vadd.xlane.f32.xlu1 %v2496_v10  ;;  %2358 = vadd.xlane.f32.xlu0 %v2357_v12 }
 0xb97   : > { %v2498_v14 = vpop.xlane.xlu1 %2497  ;;  %v2359_v15 = vpop.xlane.xlu0 %2358 }
 0xb98   : > { %v2499_v16 = vrot.slane %v2498_v14, 4  ;;  %v2360_v17 = vrot.slane %v2359_v15, 4 }
 0xb9a   : > { %v2500_v33 = vadd.f32 %v2499_v16, %v2498_v14  ;;  %v2361_v18 = vadd.f32 %v2360_v17, %v2359_v15 }
 0xb9c   : > { %v2501_v19 = vrot.slane %v2500_v33, 2  ;;  %v2362_v20 = vrot.slane %v2361_v18, 2 }
 0xb9e   : > { %v2502_v22 = vadd.f32 %v2501_v19, %v2500_v33  ;;  %v2363_v23 = vadd.f32 %v2362_v20, %v2361_v18 }
 0xba0   : > { %v2364_v24 = vrot.slane %v2363_v23, 1  ;;  %v2503_v25 = vrot.slane %v2502_v22, 1 }
 0xba2   : > { %v2365_v26 = vadd.f32 %v2364_v24, %v2363_v23  ;;  %v2504_v27 = vadd.f32 %v2503_v25, %v2502_v22 }
 0xba4   : > { %2852 = vpush %v2365_v26 }
 0xba5   : > { %2854 = vpush %v2504_v27 }
 0xbd5   : > { %s2853_s19 = spop %2852 }
 0xbd6   : > { %s2367_s18 = ssub.f32 0.0, %s2853_s19  ;;  %s2855_s20 = spop %2854 }
 0xbd7   : > { %s2506_s29 = ssub.f32 0.0, %s2855_s20 }
 0xbd8   : > { %s2368_s26 = smul.f32 0.03125, %s2367_s18 }
 0xbd9   : > { %s2507_s30 = smul.f32 0.03125, %s2506_s29 }
 0xbdb   : > { %s2509_s13 = sadd.f32 %s2507_s30, %s2368_s26 }
 0xbdc   : > { %2518 = sbr.rel (!%p2514_p13) target bundleno = 3049 (0xbe9), region = 96 }
 0xbdd   : > { %v2510_v29 = vstv %s2509_s13 }
 0xbde   : > { %v2511_v0 = vadd.f32 %v2510_v29, %v2508_v28 }
 0xbe0   : > { %2513 = vst.msk [vmem:[#allocation9] sm:$0x1] %vm1876_vm8, %v2511_v0 }
 0xbe7   : > { %v2519_v30 = vld [vmem:[#allocation9] sm:$0x1] }
 0xbe8   : > { %2520 = vst.msk [vmem:[#allocation10] sm:$0x1] %vm1876_vm8, %v2519_v30 }
 0xbe9 PF: > { %s3565_s14 = sadd.s32 4294967295, %s3031_s25   ;;  %s3044_s16 = smov [#allocation10]  }
 0xbea   : > { %p3522_p0 = scmp.eq.s32.totalorder %s3565_s14, 7  ;;  %s2528_s22 = sshll.u32 %s3044_s16, 4  ;;  %s2529_s22 = int_to_ptr.vmem [resolvable:$true] %s2528_s22 }
 0xbeb   : > { %s2965_s17 = scalar_lea.vmem %s2529_s22, 16  ;;  %s2971_s21 = scalar_lea.vmem %s2529_s22, 32 }
 0xbec   : > { %p2966_p1 = scmp.ne.s32.totalorder %s2529_s22, %s2965_s17  ;;  %p2972_p4 = scmp.lt.s32.totalorder %s2529_s22, %s2529_s22 }
 0xbed   : > { %p2973_p5 = scmp.lt.s32.totalorder %s2971_s21, %s2965_s17 }
 0xbee   : > { %p2967_p2 = pnand %p2966_p1, %p3522_p0 }
 0xbef   : > { %p2974_p6 = por %p2973_p5, %p2972_p4 }
 0xbf0   : > { %p2968_p3 = pneg %p2967_p2 }
 0xbf2   : > { %p2975_p7 = pnand %p2974_p6, %p2968_p3 }
 0xbf4   : > { %2978 = shalt.err (!%p2975_p7)
}
 0xbf5   : > { %2857 = dma.vmem_to_hbm [thread:$0]  (%p3522_p0), %s2529_s22, 16, %s3564_s12, [#allocation11]  }
 0xbf6   : > { %3010 = dma.done.wait (%p3522_p0), [#allocation11], 16  }
 0xbf7   : > { %3012 = vsyncadd (%p3522_p0), [#allocation11], 4294967280 }
 0xbf8 PF: > { %s23_s25 = sadd.s32 1, %s3031_s25   ;;  %s3567_s21 = smov %s3023_s23 }
 0xbf9   : > { %p20_p8 = scmp.ge.s32.totalorder %s23_s25, 10   ;;  %s3568_s22 = smov %s3027_s24 }
 0xbfa   : > { %s3569_s23 = smov %s3572_s27  ;;  %s3570_s24 = smov %s3576_s28 }
 0xbfb   :  { %22 = sbr.rel (!%p20_p8) target bundleno = 3 (0x3), region = 132 }
 0xc00   :  { %2541 = vsyncpa [#allocation11], 1 }
 0xc01   :  { %2543 = vsyncpa [#allocation11 + $0x1], 1 }

</bundles_post_ra>
